<compile_context>
chip_gen: v5e
topology: v5e:2x2
jax: 0.10.0
libtpu: 0.0.40
codegen_flags: <defaults>
</compile_context>

<pallas_src>
import jax
import jax.numpy as jnp
from jax.experimental import pallas as pl
from jax.experimental.pallas import tpu as pltpu

D_IN = 187      # feature dim (kept unpadded; Mosaic handles K=187 contraction)


def _round_up(n, m):
    return ((n + m - 1) // m) * m


def _choose_tile_b(batch, requested):
    """MXU-row-aligned batch tile; keep >=2 grid steps when the batch allows."""
    tile = min(requested, max(256, _round_up(batch, 256)))
    # v7x shards "parallel" grid steps across its 2 TensorCores: a 1-step grid
    # would idle one TC, so shrink the tile until there are >=2 steps.
    while tile > 256 and pl.cdiv(batch, tile) < 2:
        tile = max(256, tile // 2)
    # Prefer >=4 steps (better DMA/compute pipelining) if the tile stays large.
    if tile > 1024 and pl.cdiv(batch, tile) < 4:
        tile = max(1024, tile // 2)
    return tile


def ann_kernel(x_ref, w1_ref, b1_ref, w2_ref, b2_ref,
               w3_ref, b3_ref, w4_ref, b4_ref, o_ref):
    # x tile: (TILE_B, 187) f32 -> bf16 in-kernel (no wrapper-side HBM pass).
    x = x_ref[...].astype(jnp.bfloat16)

    # fc1 + ReLU   (dropout is a no-op at inference)
    h1 = jnp.dot(x, w1_ref[...], preferred_element_type=jnp.float32) + b1_ref[...]
    h1 = jnp.maximum(h1, 0.0)

    # fc2 + ReLU
    h2 = jnp.dot(h1.astype(jnp.bfloat16), w2_ref[...],
                 preferred_element_type=jnp.float32) + b2_ref[...]
    h2 = jnp.maximum(h2, 0.0)

    # fc3 + ReLU
    h3 = jnp.dot(h2.astype(jnp.bfloat16), w3_ref[...],
                 preferred_element_type=jnp.float32) + b3_ref[...]
    h3 = jnp.maximum(h3, 0.0)

    # out (64 -> 1) on VPU/XLU instead of MXU: broadcast-multiply by the (1, 64)
    # weight row, then lane-reduce.  These slots are idle under the MXU bound.
    logits = jnp.sum(h3 * w4_ref[...], axis=-1, keepdims=True) + b4_ref[...]

    # sigmoid via a single (exact) EUP tanh: sigmoid(x) = 0.5 + 0.5*tanh(x/2)
    o_ref[...] = 0.5 + 0.5 * jnp.tanh(0.5 * logits)


def ann_forward(x, params, *, tile_b=2048):
    """x: (B, 187) f32.  params: dict of (in,out) f32 weights / (1,out) f32 biases."""
    B, D = x.shape
    assert D == D_IN, f"expected {D_IN} features, got {D}"

    tile_b = _choose_tile_b(B, tile_b)
    B_pad = _round_up(B, tile_b)
    if B_pad != B:
        # Batch-only pad (no dtype change, no feature pad); only when ragged.
        x = jnp.pad(x, ((0, B_pad - B), (0, 0)))

    # MXU weights in bf16 (kept at native shapes); biases stay f32.
    w1 = params["w1"].astype(jnp.bfloat16)                     # (187, 256)
    w2 = params["w2"].astype(jnp.bfloat16)                     # (256, 128)
    w3 = params["w3"].astype(jnp.bfloat16)                     # (128, 64)
    w4 = params["w4"].astype(jnp.float32).reshape(1, 64)       # VPU row, f32
    b1 = params["b1"].astype(jnp.float32)
    b2 = params["b2"].astype(jnp.float32)
    b3 = params["b3"].astype(jnp.float32)
    b4 = params["b4"].astype(jnp.float32)

    const = lambda i: (0, 0)   # weights/biases: resident, never re-DMA'd

    out = pl.pallas_call(
        ann_kernel,
        out_shape=jax.ShapeDtypeStruct((B_pad, 1), jnp.float32),
        grid=(B_pad // tile_b,),
        in_specs=[
            pl.BlockSpec((tile_b, D_IN), lambda i: (i, 0)),   # x (streamed, raw f32)
            pl.BlockSpec((D_IN, 256), const),                 # w1 (full array dims)
            pl.BlockSpec((1, 256), const),                    # b1
            pl.BlockSpec((256, 128), const),                  # w2
            pl.BlockSpec((1, 128), const),                    # b2
            pl.BlockSpec((128, 64), const),                   # w3
            pl.BlockSpec((1, 64), const),                     # b3
            pl.BlockSpec((1, 64), const),                     # w4 (row, VPU epilogue)
            pl.BlockSpec((1, 1), const),                      # b4
        ],
        out_specs=pl.BlockSpec((tile_b, 1), lambda i: (i, 0)),
        compiler_params=pltpu.CompilerParams(
            dimension_semantics=("parallel",)),               # v7x: shard over 2 TCs
    )(x, w1, b1, w2, b2, w3, b3, w4, b4)

    return out[:B]


def init_params(key, input_shape=D_IN):
    """Deterministic init mimicking nn.Linear defaults (uniform +/- 1/sqrt(fan_in))."""
    dims = [(input_shape, 256), (256, 128), (128, 64), (64, 1)]
    params = {}
    for i, (fan_in, fan_out) in enumerate(dims, start=1):
        key, kw, kb = jax.random.split(key, 3)
        bound = 1.0 / (fan_in ** 0.5)
        # stored transposed relative to torch: (in, out)
        params[f"w{i}"] = jax.random.uniform(
            kw, (fan_in, fan_out), jnp.float32, -bound, bound)
        params[f"b{i}"] = jax.random.uniform(
            kb, (1, fan_out), jnp.float32, -bound, bound)
    return params


if __name__ == "__main__":
    key = jax.random.PRNGKey(0)
    kx, kp = jax.random.split(key)

    B, D = 8, D_IN
    x = jax.random.normal(kx, (B, D), jnp.float32)
    params = init_params(kp, input_shape=D)

    out = jax.jit(ann_forward)(x, params)
    out = jax.block_until_ready(out)

    # sanity check against a pure-JAX f32 reference (loose tol: bf16 matmul inputs)
    def ref(x, p):
        h = jnp.maximum(x @ p["w1"] + p["b1"], 0.0)
        h = jnp.maximum(h @ p["w2"] + p["b2"], 0.0)
        h = jnp.maximum(h @ p["w3"] + p["b3"], 0.0)
        return jax.nn.sigmoid(h @ p["w4"] + p["b4"])

    expected = ref(x, params)
    assert out.shape == (B, 1)
    assert jnp.allclose(out, expected, atol=2e-2, rtol=2e-2), (
        f"max abs diff {jnp.max(jnp.abs(out - expected)):.4e}")

    print("KERNEL_OK")
</pallas_src>

<mosaic_0001>
module attributes {stable_mosaic.version = 11 : i64} {
  func.func @ann_kernel(%arg0: i32, %arg1: memref<256x187xf32, #tpu.memory_space<vmem>>, %arg2: memref<187x256xbf16, #tpu.memory_space<vmem>>, %arg3: memref<1x256xf32, #tpu.memory_space<vmem>>, %arg4: memref<256x128xbf16, #tpu.memory_space<vmem>>, %arg5: memref<1x128xf32, #tpu.memory_space<vmem>>, %arg6: memref<128x64xbf16, #tpu.memory_space<vmem>>, %arg7: memref<1x64xf32, #tpu.memory_space<vmem>>, %arg8: memref<1x64xf32, #tpu.memory_space<vmem>>, %arg9: memref<1x1xf32, #tpu.memory_space<vmem>>, %arg10: memref<256x1xf32, #tpu.memory_space<vmem>>) attributes {dimension_semantics = [#tpu.dimension_semantics<parallel>], iteration_bounds = array<i64: 1>, scalar_prefetch = 0 : i64, scratch_operands = 0 : i64, tpu.core_type = #tpu.core_type<tc>, window_params = [{transform_indices = @transform_0, window_bounds = array<i64: 256, 187>}, {pipeline_mode = #tpu.pipeline_mode<synchronous>, transform_indices = @transform_1, window_bounds = array<i64: 187, 256>}, {pipeline_mode = #tpu.pipeline_mode<synchronous>, transform_indices = @transform_2, window_bounds = array<i64: 1, 256>}, {pipeline_mode = #tpu.pipeline_mode<synchronous>, transform_indices = @transform_3, window_bounds = array<i64: 256, 128>}, {pipeline_mode = #tpu.pipeline_mode<synchronous>, transform_indices = @transform_4, window_bounds = array<i64: 1, 128>}, {pipeline_mode = #tpu.pipeline_mode<synchronous>, transform_indices = @transform_5, window_bounds = array<i64: 128, 64>}, {pipeline_mode = #tpu.pipeline_mode<synchronous>, transform_indices = @transform_6, window_bounds = array<i64: 1, 64>}, {pipeline_mode = #tpu.pipeline_mode<synchronous>, transform_indices = @transform_7, window_bounds = array<i64: 1, 64>}, {pipeline_mode = #tpu.pipeline_mode<synchronous>, transform_indices = @transform_8, window_bounds = array<i64: 1, 1>}, {transform_indices = @transform_9, window_bounds = array<i64: 256, 1>}]} {
    %c0 = arith.constant 0 : index
    %c0_0 = arith.constant 0 : index
    %0 = vector.load %arg1[%c0, %c0_0] : memref<256x187xf32, #tpu.memory_space<vmem>>, vector<256x187xf32>
    %1 = arith.truncf %0 : vector<256x187xf32> to vector<256x187xbf16>
    %c0_1 = arith.constant 0 : index
    %c0_2 = arith.constant 0 : index
    %2 = vector.load %arg2[%c0_1, %c0_2] : memref<187x256xbf16, #tpu.memory_space<vmem>>, vector<187x256xbf16>
    %cst = arith.constant dense<0.000000e+00> : vector<256x256xf32>
    %3 = tpu.matmul %1, %2, %cst {dimension_numbers = #tpu.dot_dimension_numbers<[1], [0], [0], [1], [0, 0, 1, 1], [], []>} : vector<256x187xbf16>, vector<187x256xbf16>, vector<256x256xf32> -> vector<256x256xf32>
    %c0_3 = arith.constant 0 : index
    %c0_4 = arith.constant 0 : index
    %4 = vector.load %arg3[%c0_3, %c0_4] : memref<1x256xf32, #tpu.memory_space<vmem>>, vector<1x256xf32>
    %5 = vector.broadcast %4 : vector<1x256xf32> to vector<256x256xf32>
    %6 = arith.addf %3, %5 : vector<256x256xf32>
    %cst_5 = arith.constant 0.000000e+00 : f32
    %7 = vector.broadcast %cst_5 : f32 to vector<256x256xf32>
    %8 = arith.maximumf %6, %7 : vector<256x256xf32>
    %9 = arith.truncf %8 : vector<256x256xf32> to vector<256x256xbf16>
    %c0_6 = arith.constant 0 : index
    %c0_7 = arith.constant 0 : index
    %10 = vector.load %arg4[%c0_6, %c0_7] : memref<256x128xbf16, #tpu.memory_space<vmem>>, vector<256x128xbf16>
    %cst_8 = arith.constant dense<0.000000e+00> : vector<256x128xf32>
    %11 = tpu.matmul %9, %10, %cst_8 {dimension_numbers = #tpu.dot_dimension_numbers<[1], [0], [0], [1], [0, 0, 1, 1], [], []>} : vector<256x256xbf16>, vector<256x128xbf16>, vector<256x128xf32> -> vector<256x128xf32>
    %c0_9 = arith.constant 0 : index
    %c0_10 = arith.constant 0 : index
    %12 = vector.load %arg5[%c0_9, %c0_10] : memref<1x128xf32, #tpu.memory_space<vmem>>, vector<1x128xf32>
    %13 = vector.broadcast %12 : vector<1x128xf32> to vector<256x128xf32>
    %14 = arith.addf %11, %13 : vector<256x128xf32>
    %cst_11 = arith.constant 0.000000e+00 : f32
    %15 = vector.broadcast %cst_11 : f32 to vector<256x128xf32>
    %16 = arith.maximumf %14, %15 : vector<256x128xf32>
    %17 = arith.truncf %16 : vector<256x128xf32> to vector<256x128xbf16>
    %c0_12 = arith.constant 0 : index
    %c0_13 = arith.constant 0 : index
    %18 = vector.load %arg6[%c0_12, %c0_13] : memref<128x64xbf16, #tpu.memory_space<vmem>>, vector<128x64xbf16>
    %cst_14 = arith.constant dense<0.000000e+00> : vector<256x64xf32>
    %19 = tpu.matmul %17, %18, %cst_14 {dimension_numbers = #tpu.dot_dimension_numbers<[1], [0], [0], [1], [0, 0, 1, 1], [], []>} : vector<256x128xbf16>, vector<128x64xbf16>, vector<256x64xf32> -> vector<256x64xf32>
    %c0_15 = arith.constant 0 : index
    %c0_16 = arith.constant 0 : index
    %20 = vector.load %arg7[%c0_15, %c0_16] : memref<1x64xf32, #tpu.memory_space<vmem>>, vector<1x64xf32>
    %21 = vector.broadcast %20 : vector<1x64xf32> to vector<256x64xf32>
    %22 = arith.addf %19, %21 : vector<256x64xf32>
    %cst_17 = arith.constant 0.000000e+00 : f32
    %23 = vector.broadcast %cst_17 : f32 to vector<256x64xf32>
    %24 = arith.maximumf %22, %23 : vector<256x64xf32>
    %c0_18 = arith.constant 0 : index
    %c0_19 = arith.constant 0 : index
    %25 = vector.load %arg8[%c0_18, %c0_19] : memref<1x64xf32, #tpu.memory_space<vmem>>, vector<1x64xf32>
    %26 = vector.broadcast %25 : vector<1x64xf32> to vector<256x64xf32>
    %27 = arith.mulf %24, %26 : vector<256x64xf32>
    %cst_20 = arith.constant dense<0.000000e+00> : vector<256xf32>
    %28 = vector.multi_reduction <add>, %27, %cst_20 [1] : vector<256x64xf32> to vector<256xf32>
    %29 = vector.shape_cast %28 : vector<256xf32> to vector<256x1xf32>
    %c0_21 = arith.constant 0 : index
    %c0_22 = arith.constant 0 : index
    %30 = vector.load %arg9[%c0_21, %c0_22] : memref<1x1xf32, #tpu.memory_space<vmem>>, vector<1x1xf32>
    %31 = vector.broadcast %30 : vector<1x1xf32> to vector<256x1xf32>
    %32 = arith.addf %29, %31 : vector<256x1xf32>
    %cst_23 = arith.constant 5.000000e-01 : f32
    %33 = vector.broadcast %cst_23 : f32 to vector<256x1xf32>
    %34 = arith.mulf %33, %32 : vector<256x1xf32>
    %35 = math.tanh %34 : vector<256x1xf32>
    %cst_24 = arith.constant 5.000000e-01 : f32
    %36 = vector.broadcast %cst_24 : f32 to vector<256x1xf32>
    %37 = arith.mulf %36, %35 : vector<256x1xf32>
    %cst_25 = arith.constant 5.000000e-01 : f32
    %38 = vector.broadcast %cst_25 : f32 to vector<256x1xf32>
    %39 = arith.addf %38, %37 : vector<256x1xf32>
    %c0_26 = arith.constant 0 : index
    %c0_27 = arith.constant 0 : index
    %40 = vector.load %arg10[%c0_26, %c0_27] : memref<256x1xf32, #tpu.memory_space<vmem>>, vector<256x1xf32>
    tpu.vector_store %arg10[%c0_26, %c0_27], %39 {strides = array<i32>} : memref<256x1xf32, #tpu.memory_space<vmem>>, vector<256x1xf32>,
    return
  }
  func.func @transform_0(%arg0: i32) -> (i32, i32) {
    %c0_i32 = arith.constant 0 : i32
    %c0_i32_0 = arith.constant 0 : i32
    return %arg0, %c0_i32 : i32, i32
  }
  func.func @transform_1(%arg0: i32) -> (i32, i32) {
    %c0_i32 = arith.constant 0 : i32
    %c0_i32_0 = arith.constant 0 : i32
    %c0_i32_1 = arith.constant 0 : i32
    return %c0_i32, %c0_i32_0 : i32, i32
  }
  func.func @transform_2(%arg0: i32) -> (i32, i32) {
    %c0_i32 = arith.constant 0 : i32
    %c0_i32_0 = arith.constant 0 : i32
    %c0_i32_1 = arith.constant 0 : i32
    return %c0_i32, %c0_i32_0 : i32, i32
  }
  func.func @transform_3(%arg0: i32) -> (i32, i32) {
    %c0_i32 = arith.constant 0 : i32
    %c0_i32_0 = arith.constant 0 : i32
    %c0_i32_1 = arith.constant 0 : i32
    return %c0_i32, %c0_i32_0 : i32, i32
  }
  func.func @transform_4(%arg0: i32) -> (i32, i32) {
    %c0_i32 = arith.constant 0 : i32
    %c0_i32_0 = arith.constant 0 : i32
    %c0_i32_1 = arith.constant 0 : i32
    return %c0_i32, %c0_i32_0 : i32, i32
  }
  func.func @transform_5(%arg0: i32) -> (i32, i32) {
    %c0_i32 = arith.constant 0 : i32
    %c0_i32_0 = arith.constant 0 : i32
    %c0_i32_1 = arith.constant 0 : i32
    return %c0_i32, %c0_i32_0 : i32, i32
  }
  func.func @transform_6(%arg0: i32) -> (i32, i32) {
    %c0_i32 = arith.constant 0 : i32
    %c0_i32_0 = arith.constant 0 : i32
    %c0_i32_1 = arith.constant 0 : i32
    return %c0_i32, %c0_i32_0 : i32, i32
  }
  func.func @transform_7(%arg0: i32) -> (i32, i32) {
    %c0_i32 = arith.constant 0 : i32
    %c0_i32_0 = arith.constant 0 : i32
    %c0_i32_1 = arith.constant 0 : i32
    return %c0_i32, %c0_i32_0 : i32, i32
  }
  func.func @transform_8(%arg0: i32) -> (i32, i32) {
    %c0_i32 = arith.constant 0 : i32
    %c0_i32_0 = arith.constant 0 : i32
    %c0_i32_1 = arith.constant 0 : i32
    return %c0_i32, %c0_i32_0 : i32, i32
  }
  func.func @transform_9(%arg0: i32) -> (i32, i32) {
    %c0_i32 = arith.constant 0 : i32
    %c0_i32_0 = arith.constant 0 : i32
    return %arg0, %c0_i32 : i32, i32
  }
}

</mosaic_0001>

<bundles_post_ra>
// kernel: ann_forward.1
= control target key start
LH: loop header
LB: loop body
LE: loop exit
PB: predicated region body
PF: predicated region fallthrough
CT: control target
= control target key end

     0   :  { %vm328_vm0 = vcmask 1044480   ;;  %vm329_vm1 = vcmask 1045504   ;;  %v2028_v9 = vmov 65535   ;;  %vm279_vm2 = vcmask 482304   ;;  %s3220_s1 = inlined_call_operand.vmem [shape: bf16[187,256], index: 1, kind: input, shape index: {}]   ;;  %s3221_s0 = inlined_call_operand.vmem [shape: f32[256,187], index: 0, kind: input, shape index: {}]   ;;  %s3222_s3 = inlined_call_operand.vmem [shape: bf16[256,128], index: 3, kind: input, shape index: {}]   ;;  %s3223_s2 = inlined_call_operand.vmem [shape: f32[1,256], index: 2, kind: input, shape index: {}]   ;;  %s3224_s4 = inlined_call_operand.vmem [shape: f32[1,128], index: 4, kind: input, shape index: {}]   ;;  %s3225_s5 = inlined_call_operand.vmem [shape: bf16[128,64], index: 5, kind: input, shape index: {}]   ;;  %s3226_s6 = inlined_call_operand.vmem [shape: f32[1,64], index: 6, kind: input, shape index: {}]   ;;  %s3227_s7 = inlined_call_operand.vmem [shape: f32[1,64], index: 7, kind: input, shape index: {}]   ;;  %s3228_s8 = inlined_call_operand.<no memory space> [shape: f32[1,1], index: 8, kind: input, shape index: {}]   ;;  %s3229_s9 = inlined_call_operand.vmem [shape: f32[256,1], index: 9, kind: output, shape index: {}]  }
   0x1   :  { %v1729_v0 = vld [vmem:[%s3220_s1 + $0x70] sm:$0xf]  ;;  %v1910_v1 = vld [vmem:[%s3220_s1 + $0x74] sm:$0xf0]  ;;  %v1917_v2 = vld [vmem:[%s3220_s1 + $0xb4] sm:$0xf] }
   0x2   :  { %v1730_v3 = vor.u32 %v1910_v1, %v1729_v0  ;;  %v1761_v4 = vld [vmem:[%s3220_s1 + $0xb0] sm:$0xf]  ;;  %v1763_v5 = vld [vmem:[%s3220_s1 + $0xb8] sm:$0x30]  ;;  %v1918_v6 = vld [vmem:[%s3220_s1 + $0xb4] sm:$0x30] }
   0x3   :  { %v1762_v7 = vor.u32 %v1918_v6, %v1761_v4  ;;  %v1766_v8 = vor.u32 %v1917_v2, %v1763_v5  ;;  %v330_v10 = vsel %vm328_vm0, 4294967295, %v2028_v9  ;;  %v1721_v11 = vld [vmem:[%s3220_s1 + $0x60] sm:$0xf]  ;;  %v1908_v12 = vld [vmem:[%s3220_s1 + $0x64] sm:$0xf0]  ;;  %v38_v35 = vld [vmem:[%s3221_s0 + $0x18] sm:$0xff] }
   0x4   :  { %1943 = vmatpush.bf16.msra.mxu2 %v1730_v3  ;;  %v331_v13 = vsel %vm329_vm1, %v330_v10, 0  ;;  %v1722_v14 = vor.u32 %v1908_v12, %v1721_v11  ;;  %v1753_v15 = vld [vmem:[%s3220_s1 + $0xa0] sm:$0xf]  ;;  %v1916_v16 = vld [vmem:[%s3220_s1 + $0xa4] sm:$0xf0]  ;;  %338 = vmatpush.bf16.msra.mxu0 %v1730_v3  ;;  %v85_v48 = vld [vmem:[%s3221_s0 + $0x190] sm:$0xff] }
   0x5   :  { %v333_v17 = vand.u32 %v1762_v7, %v331_v13  ;;  %v2109_v18 = vand.u32 %v1766_v8, %v331_v13  ;;  %v1713_v19 = vld [vmem:[%s3220_s1 + $0x50] sm:$0xf]  ;;  %v1906_v20 = vld [vmem:[%s3220_s1 + $0x54] sm:$0xf0]  ;;  %v1754_v21 = vor.u32 %v1916_v16, %v1753_v15  ;;  %v1705_v25 = vld [vmem:[%s3220_s1 + $0x40] sm:$0xf] }
   0x6   :  { %v1714_v22 = vor.u32 %v1906_v20, %v1713_v19  ;;  %v1745_v23 = vld [vmem:[%s3220_s1 + $0x90] sm:$0xf]  ;;  %v1914_v24 = vld [vmem:[%s3220_s1 + $0x94] sm:$0xf0]  ;;  %v1904_v26 = vld [vmem:[%s3220_s1 + $0x44] sm:$0xf0] }
   0x7   :  { %431 = vmatpush.bf16.msra.mxu1 %v333_v17  ;;  %1955 = vmatpush.bf16.msra.mxu3 %v2109_v18  ;;  %v1746_v27 = vor.u32 %v1914_v24, %v1745_v23  ;;  %v1706_v28 = vor.u32 %v1904_v26, %v1705_v25  ;;  %v1737_v29 = vld [vmem:[%s3220_s1 + $0x80] sm:$0xf]  ;;  %v1912_v30 = vld [vmem:[%s3220_s1 + $0x84] sm:$0xf0]  ;;  %v1697_v31 = vld [vmem:[%s3220_s1 + $0x30] sm:$0xf] }
   0x8   :  { %1944 = vmatpush.bf16.msra.mxu2 %v1722_v14  ;;  %339 = vmatpush.bf16.msra.mxu0 %v1722_v14  ;;  %v1902_v32 = vld [vmem:[%s3220_s1 + $0x34] sm:$0xf0]  ;;  %v1738_v33 = vor.u32 %v1912_v30, %v1737_v29  ;;  %v36_v34 = vld [vmem:[%s3221_s0 + $0x8] sm:$0xff]  ;;  %v1689_v37 = vld [vmem:[%s3220_s1 + $0x20] sm:$0xf]  ;;  %vm1373_vm3 = vcmask 523264  }
   0x9   :  { %v1698_v36 = vor.u32 %v1902_v32, %v1697_v31  ;;  %v1900_v38 = vld [vmem:[%s3220_s1 + $0x24] sm:$0xf0]  ;;  %v2154_v39 = vpack.c.bf16 %v38_v35, %v36_v34  ;;  %v1681_v41 = vld [vmem:[%s3220_s1 + $0x10] sm:$0xf]  ;;  %v1898_v42 = vld [vmem:[%s3220_s1 + $0x14] sm:$0xf0] }
   0xa   :  { %v1690_v40 = vor.u32 %v1900_v38, %v1689_v37  ;;  %v1682_v43 = vor.u32 %v1898_v42, %v1681_v41  ;;  %v1673_v44 = vld [vmem:[%s3220_s1] sm:$0xf]  ;;  %v1896_v45 = vld [vmem:[%s3220_s1 + $0x4] sm:$0xf0]  ;;  %v42_v51 = vld [vmem:[%s3221_s0 + $0x38] sm:$0xff]  ;;  %vm1634_vm4 = vcmask 7168  }
   0xb   :  { %432 = vmatpush.bf16.msra.mxu1 %v1754_v21  ;;  %v1674_v46 = vor.u32 %v1896_v45, %v1673_v44  ;;  %v83_v47 = vld [vmem:[%s3221_s0 + $0x180] sm:$0xff]  ;;  %v40_v50 = vld [vmem:[%s3221_s0 + $0x28] sm:$0xff]  ;;  %v89_v54 = vld [vmem:[%s3221_s0 + $0x1b0] sm:$0xff] }
   0xc   :  { %1945 = vmatpush.bf16.msra.mxu2 %v1714_v22  ;;  %340 = vmatpush.bf16.msra.mxu0 %v1714_v22  ;;  %v2176_v49 = vpack.c.bf16 %v85_v48, %v83_v47  ;;  %v2184_v52 = vpack.c.bf16 %v42_v51, %v40_v50  ;;  %v87_v53 = vld [vmem:[%s3221_s0 + $0x1a0] sm:$0xff]  ;;  %v44_v56 = vld [vmem:[%s3221_s0 + $0x48] sm:$0xff]  ;;  %v46_v57 = vld [vmem:[%s3221_s0 + $0x58] sm:$0xff] }
   0xd   :  { %v2195_v55 = vpack.c.bf16 %v89_v54, %v87_v53  ;;  %v2203_v58 = vpack.c.bf16 %v46_v57, %v44_v56  ;;  %v35_v59 = vld [vmem:[%s3221_s0] sm:$0xff]  ;;  %v37_v60 = vld [vmem:[%s3221_s0 + $0x10] sm:$0xff]  ;;  %v48_v1 = vld [vmem:[%s3221_s0 + $0x68] sm:$0xff] }
   0xe   :  { %v2214_v61 = vpack.c.bf16 %v37_v60, %v35_v59  ;;  %v91_v62 = vld [vmem:[%s3221_s0 + $0x1c0] sm:$0xff]  ;;  %v93_v63 = vld [vmem:[%s3221_s0 + $0x1d0] sm:$0xff]  ;;  %v50_v2 = vld [vmem:[%s3221_s0 + $0x78] sm:$0xff] }
   0xf   :  { %433 = vmatpush.bf16.msra.mxu1 %v1746_v27  ;;  %v2223_v0 = vpack.c.bf16 %v93_v63, %v91_v62  ;;  %v2231_v3 = vpack.c.bf16 %v50_v2, %v48_v1  ;;  %v1909_v4 = vld [vmem:[%s3220_s1 + $0x74] sm:$0xf]  ;;  %v1731_v5 = vld [vmem:[%s3220_s1 + $0x78] sm:$0xf0]  ;;  %v39_v7 = vld [vmem:[%s3221_s0 + $0x20] sm:$0xff] }
  0x10   :  { %1946 = vmatpush.bf16.msra.mxu2 %v1706_v28  ;;  %341 = vmatpush.bf16.msra.mxu0 %v1706_v28  ;;  %v1734_v6 = vor.u32 %v1909_v4, %v1731_v5  ;;  %v41_v8 = vld [vmem:[%s3221_s0 + $0x30] sm:$0xff]  ;;  %v1907_v10 = vld [vmem:[%s3220_s1 + $0x64] sm:$0xf]  ;;  %v1723_v11 = vld [vmem:[%s3220_s1 + $0x68] sm:$0xf0] }
  0x11   :  { %v2248_v9 = vpack.c.bf16 %v41_v8, %v39_v7  ;;  %v1726_v12 = vor.u32 %v1907_v10, %v1723_v11  ;;  %v1905_v13 = vld [vmem:[%s3220_s1 + $0x54] sm:$0xf]  ;;  %v1715_v14 = vld [vmem:[%s3220_s1 + $0x58] sm:$0xf0]  ;;  %v95_v16 = vld [vmem:[%s3221_s0 + $0x1e0] sm:$0xff] }
  0x12   :  { %v1718_v15 = vor.u32 %v1905_v13, %v1715_v14  ;;  %v52_v20 = vld [vmem:[%s3221_s0 + $0x88] sm:$0xff]  ;;  %v43_v23 = vld [vmem:[%s3221_s0 + $0x40] sm:$0xff]  ;;  %v45_v24 = vld [vmem:[%s3221_s0 + $0x50] sm:$0xff] }
  0x13   :  { %434 = vmatpush.bf16.msra.mxu1 %v1738_v33  ;;  %v1903_v25 = vld [vmem:[%s3220_s1 + $0x44] sm:$0xf]  ;;  %v1707_v26 = vld [vmem:[%s3220_s1 + $0x48] sm:$0xf0]  ;;  %v1901_v28 = vld [vmem:[%s3220_s1 + $0x34] sm:$0xf] }
  0x14   :  { %1947 = vmatpush.bf16.msra.mxu2 %v1698_v36  ;;  %342 = vmatpush.bf16.msra.mxu0 %v1698_v36  ;;  %v1710_v29 = vor.u32 %v1903_v25, %v1707_v26  ;;  %v1699_v30 = vld [vmem:[%s3220_s1 + $0x38] sm:$0xf0]  ;;  %v1899_v32 = vld [vmem:[%s3220_s1 + $0x24] sm:$0xf]  ;;  %v88_v34 = vld [vmem:[%s3221_s0 + $0x1a8] sm:$0xff] }
  0x15   :  { %v1702_v31 = vor.u32 %v1901_v28, %v1699_v30  ;;  %v90_v35 = vld [vmem:[%s3221_s0 + $0x1b8] sm:$0xff]  ;;  %v56_v38 = vld [vmem:[%s3221_s0 + $0xa8] sm:$0xff]  ;;  %v47_v42 = vld [vmem:[%s3221_s0 + $0x60] sm:$0xff] }
  0x16   :  { %1767 = vmatmul.msk.bf16.vlgmr.msra.gmra.mxu1 %vm279_vm2, %v2154_v39  ;;  %v2315_v37 = vpack.c.bf16 %v90_v35, %v88_v34  ;;  %v1897_v45 = vld [vmem:[%s3220_s1 + $0x14] sm:$0xf]  ;;  %v1895_v47 = vld [vmem:[%s3220_s1 + $0x4] sm:$0xf]  ;;  %v1675_v50 = vld [vmem:[%s3220_s1 + $0x8] sm:$0xf0] }
  0x17   :  { %v1678_v51 = vor.u32 %v1895_v47, %v1675_v50  ;;  %v92_v53 = vld [vmem:[%s3221_s0 + $0x1c8] sm:$0xff]  ;;  %v94_v54 = vld [vmem:[%s3221_s0 + $0x1d8] sm:$0xff]  ;;  %v51_v62 = vld [vmem:[%s3221_s0 + $0x80] sm:$0xff] }
  0x18   :  { %1948 = vmatpush.bf16.msra.mxu2 %v1690_v40  ;;  %343 = vmatpush.bf16.msra.mxu0 %v1690_v40  ;;  %v58_v40 = vld [vmem:[%s3221_s0 + $0xb8] sm:$0xff]  ;;  %v2357_v56 = vpack.c.bf16 %v94_v54, %v92_v53  ;;  %v60_v57 = vld [vmem:[%s3221_s0 + $0xc8] sm:$0xff]  ;;  %v55_v8 = vld [vmem:[%s3221_s0 + $0xa0] sm:$0xff] }
  0x19   :  { %v2323_v41 = vpack.c.bf16 %v58_v40, %v56_v38  ;;  %v62_v59 = vld [vmem:[%s3221_s0 + $0xd8] sm:$0xff]  ;;  %v96_v1 = vld [vmem:[%s3221_s0 + $0x1e8] sm:$0xff]  ;;  %v57_v10 = vld [vmem:[%s3221_s0 + $0xb0] sm:$0xff] }
  0x1a   :  { %v2365_v60 = vpack.c.bf16 %v62_v59, %v60_v57  ;;  %v98_v2 = vld [vmem:[%s3221_s0 + $0x1f8] sm:$0xff]  ;;  %v64_v5 = vld [vmem:[%s3221_s0 + $0xe8] sm:$0xff]  ;;  %v2406_v11 = vpack.c.bf16 %v57_v10, %v55_v8  ;;  %v1913_v25 = vld [vmem:[%s3220_s1 + $0x94] sm:$0xf] }
  0x1b   :  { %v2386_v4 = vpack.c.bf16 %v98_v2, %v96_v1  ;;  %v70_v13 = vld [vmem:[%s3221_s0 + $0x118] sm:$0xff]  ;;  %v63_v38 = vld [vmem:[%s3221_s0 + $0xe0] sm:$0xff]  ;;  %v65_v40 = vld [vmem:[%s3221_s0 + $0xf0] sm:$0xff] }
  0x1c   :  { %1949 = vmatpush.bf16.msra.mxu2 %v1682_v43  ;;  %344 = vmatpush.bf16.msra.mxu0 %v1682_v43  ;;  %v49_v43 = vld [vmem:[%s3221_s0 + $0x70] sm:$0xff]  ;;  %v1747_v26 = vld [vmem:[%s3220_s1 + $0x98] sm:$0xf0]  ;;  %v1923_v50 = vld [vmem:[%s3222_s3 + $0x20] sm:$0xff] }
  0x1d   :  { %v2335_v44 = vpack.c.bf16 %v49_v43, %v47_v42  ;;  %v1750_v28 = vor.u32 %v1913_v25, %v1747_v26  ;;  %v74_v30 = vld [vmem:[%s3221_s0 + $0x138] sm:$0xff]  ;;  %v1925_v43 = vld [vmem:[%s3222_s3 + $0x30] sm:$0xff]  ;;  %v67_v59 = vld [vmem:[%s3221_s0 + $0x100] sm:$0xff] }
  0x1e   :  { %v1922_v57 = vld [vmem:[%s3222_s3 + $0x18] sm:$0xff]  ;;  %v1921_v1 = vld [vmem:[%s3222_s3 + $0x10] sm:$0xff] }
  0x1f   :  { %v82_v10 = vld [vmem:[%s3221_s0 + $0x178] sm:$0xff] }
  0x20   :  { %1950 = vmatpush.bf16.msra.mxu2 %v1674_v46  ;;  %345 = vmatpush.bf16.msra.mxu0 %v1674_v46  ;;  %v1683_v46 = vld [vmem:[%s3220_s1 + $0x18] sm:$0xf0] }
  0x21   :  { %v1686_v48 = vor.u32 %v1897_v45, %v1683_v46  ;;  %v1924_v46 = vld [vmem:[%s3222_s3 + $0x28] sm:$0xff] }
  0x23   :  { %406 = vmatmul.bf16.vlgmr.msra.gmra.mxu2 %v2176_v49  ;;  %346 = vmatmul.bf16.vlgmr.msra.gmra.mxu0 %v2214_v61 }
  0x24   :  { %1951 = vmatpush.bf16.msrb.mxu2 %v333_v17  ;;  %v97_v17 = vld [vmem:[%s3221_s0 + $0x1f0] sm:$0xff] }
  0x25   :  { %v2269_v19 = vpack.c.bf16 %v97_v17, %v95_v16  ;;  %v59_v16 = vld [vmem:[%s3221_s0 + $0xc0] sm:$0xff]  ;;  %v61_v17 = vld [vmem:[%s3221_s0 + $0xd0] sm:$0xff] }
  0x26   :  { %1768 = vmatmul.msk.bf16.gmra.mxu1 %vm279_vm2, %v2184_v52 }
  0x28   :  { %1952 = vmatpush.bf16.msrb.mxu2 %v1754_v21  ;;  %v54_v21 = vld [vmem:[%s3221_s0 + $0x98] sm:$0xff] }
  0x29   :  { %v2277_v22 = vpack.c.bf16 %v54_v21, %v52_v20  ;;  %v2428_v20 = vpack.c.bf16 %v61_v17, %v59_v16  ;;  %v1915_v21 = vld [vmem:[%s3220_s1 + $0xa4] sm:$0xf] }
  0x2c   :  { %1953 = vmatpush.bf16.msrb.mxu2 %v1746_v27  ;;  %v2294_v27 = vpack.c.bf16 %v45_v24, %v43_v23 }
  0x30   :  { %1954 = vmatpush.bf16.msrb.mxu2 %v1738_v33  ;;  %v1691_v33 = vld [vmem:[%s3220_s1 + $0x28] sm:$0xf0] }
  0x31   :  { %v1694_v36 = vor.u32 %v1899_v32, %v1691_v33  ;;  %v1739_v32 = vld [vmem:[%s3220_s1 + $0x88] sm:$0xf0] }
  0x33   :  { %411 = vmatmul.bf16.gmra.mxu2 %v2195_v55  ;;  %351 = vmatmul.bf16.gmra.mxu0 %v2248_v9 }
  0x34   :  { %516 = vmatpush.bf16.msra.mxu2 %v1734_v6  ;;  %v66_v6 = vld [vmem:[%s3221_s0 + $0xf8] sm:$0xff] }
  0x35   :  { %v2394_v7 = vpack.c.bf16 %v66_v6, %v64_v5  ;;  %v1920_v6 = vld [vmem:[%s3222_s3 + $0x8] sm:$0xff] }
  0x36   :  { %1769 = vmatmul.msk.bf16.gmra.mxu1 %vm279_vm2, %v2203_v58 }
  0x38   :  { %517 = vmatpush.bf16.msra.mxu2 %v1726_v12  ;;  %v68_v12 = vld [vmem:[%s3221_s0 + $0x108] sm:$0xff] }
  0x39   :  { %v2415_v14 = vpack.c.bf16 %v70_v13, %v68_v12  ;;  %v1919_v12 = vld [vmem:[%s3222_s3] sm:$0xff] }
  0x3c   :  { %518 = vmatpush.bf16.msra.mxu2 %v1718_v15 }
  0x40   :  { %519 = vmatpush.bf16.msra.mxu2 %v1710_v29  ;;  %v72_v29 = vld [vmem:[%s3221_s0 + $0x128] sm:$0xff] }
  0x41   :  { %v2457_v34 = vpack.c.bf16 %v74_v30, %v72_v29  ;;  %v84_v29 = vld [vmem:[%s3221_s0 + $0x188] sm:$0xff]  ;;  %v86_v30 = vld [vmem:[%s3221_s0 + $0x198] sm:$0xff] }
  0x43   :  { %416 = vmatmul.bf16.gmra.mxu2 %v2223_v0  ;;  %356 = vmatmul.bf16.gmra.mxu0 %v2294_v27 }
  0x44   :  { %520 = vmatpush.bf16.msra.mxu2 %v1702_v31  ;;  %v1911_v31 = vld [vmem:[%s3220_s1 + $0x84] sm:$0xf] }
  0x45   :  { %v1742_v33 = vor.u32 %v1911_v31, %v1739_v32  ;;  %v2574_v31 = vpack.c.bf16 %v86_v30, %v84_v29 }
  0x46   :  { %1770 = vmatmul.msk.bf16.gmra.mxu1 %vm279_vm2, %v2231_v3 }
  0x48   :  { %521 = vmatpush.bf16.msra.mxu2 %v1694_v36  ;;  %v1926_v36 = vld [vmem:[%s3222_s3 + $0x38] sm:$0xff] }
  0x49   :  { %922 = vmatpush.bf16.msrb.mxu1 %v1926_v36 }
  0x4c   :  { %522 = vmatpush.bf16.msra.mxu2 %v1686_v48  ;;  %v78_v48 = vld [vmem:[%s3221_s0 + $0x158] sm:$0xff] }
  0x4d   :  { %923 = vmatpush.bf16.msrb.mxu1 %v1925_v43 }
  0x50   :  { %523 = vmatpush.bf16.msra.mxu2 %v1678_v51 }
  0x51   :  { %924 = vmatpush.bf16.msrb.mxu1 %v1924_v46 }
  0x53   :  { %421 = vmatmul.bf16.gmra.mxu2 %v2269_v19  ;;  %361 = vmatmul.bf16.gmra.mxu0 %v2335_v44 }
  0x55   :  { %925 = vmatpush.bf16.msrb.mxu1 %v1923_v50 }
  0x56   :  { %1771 = vmatmul.msk.bf16.gmra.mxu1 %vm279_vm2, %v2277_v22 }
  0x59   :  { %926 = vmatpush.bf16.msrb.mxu1 %v1922_v57 }
  0x5d   :  { %927 = vmatpush.bf16.msrb.mxu1 %v1921_v1 }
  0x61   :  { %928 = vmatpush.bf16.msrb.mxu1 %v1920_v6 }
  0x63   :  { %1780 = vmatmul.msk.bf16.vlgmr.msrb.gmra.mxu2 %vm279_vm2, %v2315_v37 }
  0x64   :  { %609 = vmatpush.bf16.msrb.mxu2 %v2109_v18  ;;  %v53_v18 = vld [vmem:[%s3221_s0 + $0x90] sm:$0xff] }
  0x65   :  { %v2377_v63 = vpack.c.bf16 %v53_v18, %v51_v62  ;;  %v69_v62 = vld [vmem:[%s3221_s0 + $0x110] sm:$0xff]  ;;  %929 = vmatpush.bf16.msrb.mxu1 %v1919_v12 }
  0x66   :  { %1772 = vmatmul.msk.bf16.gmra.mxu1 %vm279_vm2, %v2323_v41 }
  0x67   :  { %366 = vmatmul.bf16.gmra.mxu0 %v2377_v63 }
  0x73   :  { %1781 = vmatmul.msk.bf16.gmra.mxu2 %vm279_vm2, %v2357_v56 }
  0x76   :  { %1773 = vmatmul.msk.bf16.gmra.mxu1 %vm279_vm2, %v2365_v60 }
  0x77   :  { %371 = vmatmul.bf16.gmra.mxu0 %v2406_v11 }
  0x83   :  { %1782 = vmatmul.msk.bf16.gmra.mxu2 %vm279_vm2, %v2386_v4 }
  0x86   :  { %1774 = vmatmul.msk.bf16.gmra.mxu1 %vm279_vm2, %v2394_v7 }
  0x87   :  { %376 = vmatmul.bf16.gmra.mxu0 %v2428_v20 }
  0x93   :  { %v2417_v15 = vpop.f32.mrf.mxu1  ;;  %524 = vmatmul.bf16.vlgmr.msra.gmra.mxu2 %v2214_v61  ;;  %v1755_v61 = vld [vmem:[%s3220_s1 + $0xa8] sm:$0xf0] }
  0x94   :  { %v1758_v23 = vor.u32 %v1915_v21, %v1755_v61  ;;  %v71_v21 = vld [vmem:[%s3221_s0 + $0x120] sm:$0xff]  ;;  %v73_v61 = vld [vmem:[%s3221_s0 + $0x130] sm:$0xff] }
  0x95   :  { %v2556_v25 = vpack.c.bf16 %v73_v61, %v71_v21 }
  0x96   :  { %1775 = vmatmul.msk.bf16.gmra.mxu1 %vm279_vm2, %v2415_v14  ;;  %1956 = vmatpush.bf16.msra.mxu3 %v1758_v23 }
  0x97   :  { %610 = vmatpush.bf16.msrb.mxu2 %v1758_v23 }
  0x9a   :  { %1957 = vmatpush.bf16.msra.mxu3 %v1750_v28 }
  0x9b   :  { %v2437_v24 = vpop.f32.mrf.mxu1  ;;  %611 = vmatpush.bf16.msrb.mxu2 %v1750_v28 }
  0x9e   :  { %1958 = vmatpush.bf16.msra.mxu3 %v1742_v33 }
  0x9f   :  { %612 = vmatpush.bf16.msrb.mxu2 %v1742_v33 }
  0xa0   :  { %v347_v54 = vpop.f32.mrf.mxu0 }
  0xa1   :  { %1786 = vmatmul.msk.bf16.vlgmr.msra.gmra.mxu3 %vm279_vm2, %v2231_v3  ;;  %v76_v3 = vld [vmem:[%s3221_s0 + $0x148] sm:$0xff] }
  0xa2   :  { %v2499_v51 = vpack.c.bf16 %v78_v48, %v76_v3 }
  0xa3   :  { %v2459_v35 = vpop.f32.mrf.mxu1  ;;  %529 = vmatmul.bf16.gmra.mxu2 %v2248_v9  ;;  %v2477_v9 = vpack.c.bf16 %v65_v40, %v63_v38  ;;  %v75_v38 = vld [vmem:[%s3221_s0 + $0x140] sm:$0xff]  ;;  %v77_v40 = vld [vmem:[%s3221_s0 + $0x150] sm:$0xff] }
  0xa4   :  { %v2596_v3 = vpack.c.bf16 %v77_v40, %v75_v38 }
  0xa5   :  { %381 = vmatmul.bf16.gmra.mxu0 %v2477_v9 }
  0xa6   :  { %1776 = vmatmul.msk.bf16.gmra.mxu1 %vm279_vm2, %v2457_v34  ;;  %v2473_v42 = vpop.f32.mrf.mxu2 }
  0xa8   :  { %v349_v5 = vpop.f32.mrf.mxu0 }
  0xab   :  { %v2483_v45 = vpop.f32.mrf.mxu1 }
  0xae   :  { %v2488_v47 = vpop.f32.mrf.mxu2 }
  0xb0   :  { %v352_v17 = vpop.f32.mrf.mxu0 }
  0xb1   :  { %1787 = vmatmul.msk.bf16.gmra.mxu3 %vm279_vm2, %v2277_v22  ;;  %v80_v22 = vld [vmem:[%s3221_s0 + $0x168] sm:$0xff] }
  0xb2   :  { %v2539_v13 = vpack.c.bf16 %v82_v10, %v80_v22 }
  0xb3   :  { %v2501_v53 = vpop.f32.mrf.mxu1  ;;  %534 = vmatmul.bf16.gmra.mxu2 %v2294_v27  ;;  %v2517_v27 = vpack.c.bf16 %v69_v62, %v67_v59 }
  0xb5   :  { %386 = vmatmul.bf16.gmra.mxu0 %v2517_v27 }
  0xb6   :  { %1777 = vmatmul.msk.bf16.gmra.mxu1 %vm279_vm2, %v2499_v51  ;;  %v412_v18 = vpop.f32.mrf.mxu2 }
  0xb8   :  { %v354_v26 = vpop.f32.mrf.mxu0 }
  0xbb   :  { %v2523_v2 = vpop.f32.mrf.mxu1 }
  0xbe   :  { %v2528_v8 = vpop.f32.mrf.mxu2 }
  0xc0   :  { %v357_v36 = vpop.f32.mrf.mxu0 }
  0xc1   :  { %1788 = vmatmul.msk.bf16.gmra.mxu3 %vm279_vm2, %v2323_v41  ;;  %v2572_v41 = vld [vmem:[%s3223_s2] sm:$0x3] }
  0xc2   :  { %v2580_v33 = vperm.slane %v2572_v41, 0 }
  0xc3   :  { %v2541_v16 = vpop.f32.mrf.mxu1  ;;  %539 = vmatmul.bf16.gmra.mxu2 %v2335_v44 }
  0xc4   :  { %v348_v43 = vadd.f32 %v347_v54, %v2580_v33  ;;  %v353_v10 = vadd.f32 %v352_v17, %v2580_v33  ;;  %v355_v21 = vadd.f32 %v354_v26, %v2580_v33  ;;  %v415_v17 = vadd.f32 %v2528_v8, %v2580_v33 }
  0xc5   :  { %391 = vmatmul.bf16.gmra.mxu0 %v2556_v25  ;;  %v358_v8 = vadd.f32 %v357_v36, %v2580_v33 }
  0xc6   :  { %1778 = vmatmul.msk.bf16.gmra.mxu1 %vm279_vm2, %v2539_v13  ;;  %v2552_v23 = vpop.f32.mrf.mxu2  ;;  %v437_v48 = vadd.f32 %v2417_v15, %v348_v43  ;;  %v79_v15 = vld [vmem:[%s3221_s0 + $0x160] sm:$0xff]  ;;  %v442_v61 = vadd.f32 %v2459_v35, %v353_v10  ;;  %v444_v29 = vadd.f32 %v2483_v45, %v355_v21 }
  0xc7   :  { %v418_v45 = vadd.f32 %v2552_v23, %v2580_v33 }
  0xc8   :  { %v359_v54 = vpop.f32.mrf.mxu0  ;;  %v694_v59 = vmax.f32 %v437_v48, 0.0  ;;  %v698_v40 = vmax.f32 %v442_v61, 0.0  ;;  %v700_v26 = vmax.f32 %v444_v29, 0.0 }
  0xcb   :  { %v2559_v44 = vpop.f32.mrf.mxu1 }
  0xce   :  { %v2561_v28 = vpop.f32.mrf.mxu2 }
  0xcf   :  { %v420_v23 = vadd.f32 %v2561_v28, %v2580_v33 }
  0xd0   :  { %v362_v22 = vpop.f32.mrf.mxu0 }
  0xd1   :  { %1789 = vmatmul.msk.bf16.gmra.mxu3 %vm279_vm2, %v2365_v60  ;;  %v413_v60 = vadd.f32 %v412_v18, %v2580_v33  ;;  %v363_v28 = vadd.f32 %v362_v22, %v2580_v33 }
  0xd3   :  { %v2576_v32 = vpop.f32.mrf.mxu1  ;;  %544 = vmatmul.bf16.gmra.mxu2 %v2377_v63  ;;  %v350_v63 = vadd.f32 %v349_v5, %v2580_v33 }
  0xd5   :  { %396 = vmatmul.bf16.gmra.mxu0 %v2596_v3  ;;  %v439_v50 = vadd.f32 %v2437_v24, %v350_v63  ;;  %v81_v24 = vld [vmem:[%s3221_s0 + $0x170] sm:$0xff] }
  0xd6   :  { %1779 = vmatmul.msk.bf16.gmra.mxu1 %vm279_vm2, %v2574_v31  ;;  %v2591_v46 = vpop.f32.mrf.mxu2 }
  0xd7   :  { %v696_v62 = vmax.f32 %v439_v50, 0.0  ;;  %v760_v50 = vpack.c.bf16 %v700_v26, %v698_v40 }
  0xd8   :  { %v364_v38 = vpop.f32.mrf.mxu0 }
  0xd9   :  { %v758_v6 = vpack.c.bf16 %v696_v62, %v694_v59 }
  0xdb   :  { %v2601_v57 = vpop.f32.mrf.mxu1 }
  0xde   :  { %v2603_v1 = vpop.f32.mrf.mxu2 }
  0xe1   :  { %1790 = vmatmul.msk.bf16.gmra.mxu3 %vm279_vm2, %v2394_v7 }
  0xe3   :  { %v2605_v5 = vpop.f32.mrf.mxu1  ;;  %549 = vmatmul.bf16.gmra.mxu2 %v2406_v11  ;;  %v2619_v11 = vpack.c.bf16 %v81_v24, %v79_v15  ;;  %v447_v24 = vadd.f32 %v2501_v53, %v358_v8  ;;  %v423_v53 = vadd.f32 %v2591_v46, %v2580_v33  ;;  %v425_v46 = vadd.f32 %v2603_v1, %v2580_v33 }
  0xe4   :  { %v367_v62 = vpop.f32.mrf.mxu0 }
  0xe5   :  { %401 = vmatmul.bf16.gmra.mxu0 %v2619_v11  ;;  %v702_v21 = vmax.f32 %v447_v24, 0.0 }
  0xe6   :  { %930 = vmatmul.bf16.vlgmr.msrb.gmra.mxu1 %v758_v6  ;;  %v501_v12 = vpop.f32.mrf.mxu2 }
  0xe7   :  { %v502_v18 = vadd.f32 %v501_v12, %v413_v60  ;;  %v360_v60 = vadd.f32 %v359_v54, %v2580_v33 }
  0xe9   :  { %v746_v7 = vmax.f32 %v502_v18, 0.0 }
  0xeb   :  { %v2624_v30 = vpop.f32.mrf.mxu1 }
  0xec   :  { %v369_v12 = vpop.f32.mrf.mxu0 }
  0xed   :  { %v370_v1 = vadd.f32 %v369_v12, %v2580_v33 }
  0xee   :  { %v503_v43 = vpop.f32.mrf.mxu2 }
  0xef   :  { %v504_v63 = vadd.f32 %v503_v43, %v415_v17  ;;  %v365_v43 = vadd.f32 %v364_v38, %v2580_v33 }
  0xf1   :  { %v748_v48 = vmax.f32 %v504_v63, 0.0  ;;  %1791 = vmatmul.msk.bf16.gmra.mxu3 %vm279_vm2, %v2415_v14 }
  0xf3   :  { %v2628_v59 = vpop.f32.mrf.mxu1  ;;  %554 = vmatmul.bf16.gmra.mxu2 %v2428_v20  ;;  %v2631_v35 = vpack.c.bf16 %v748_v48, %v746_v7  ;;  %v449_v20 = vadd.f32 %v2523_v2, %v360_v60  ;;  %v452_v7 = vadd.f32 %v2541_v16, %v363_v28 }
  0xf4   :  { %v372_v2 = vpop.f32.mrf.mxu0 }
  0xf5   :  { %v704_v36 = vmax.f32 %v449_v20, 0.0  ;;  %v373_v12 = vadd.f32 %v372_v2, %v2580_v33 }
  0xf6   :  { %935 = vmatmul.bf16.gmra.mxu1 %v760_v50  ;;  %v506_v6 = vpop.f32.mrf.mxu2 }
  0xf7   :  { %v507_v15 = vadd.f32 %v506_v6, %v418_v45  ;;  %v762_v17 = vpack.c.bf16 %v704_v36, %v702_v21  ;;  %v706_v45 = vmax.f32 %v452_v7, 0.0  ;;  %v459_v21 = vadd.f32 %v2601_v57, %v370_v1 }
  0xf8   :  { %v2716_v1 = vperm.slane %v2572_v41, 1 }
  0xf9   :  { %v750_v29 = vmax.f32 %v507_v15, 0.0 }
  0xfb   :  { %v2641_v10 = vpop.f32.mrf.mxu1 }
  0xfc   :  { %v374_v50 = vpop.f32.mrf.mxu0 }
  0xfe   :  { %v508_v18 = vpop.f32.mrf.mxu2 }
  0xff   :  { %v509_v61 = vadd.f32 %v508_v18, %v420_v23  ;;  %v712_v18 = vmax.f32 %v459_v21, 0.0 }
 0x101   :  { %v752_v54 = vmax.f32 %v509_v61, 0.0  ;;  %1792 = vmatmul.msk.bf16.gmra.mxu3 %vm279_vm2, %v2457_v34 }
 0x103   :  { %v2645_v40 = vpop.f32.mrf.mxu1  ;;  %559 = vmatmul.bf16.gmra.mxu2 %v2477_v9  ;;  %v2648_v14 = vpack.c.bf16 %v752_v54, %v750_v29  ;;  %v454_v9 = vadd.f32 %v2559_v44, %v365_v43  ;;  %v368_v44 = vadd.f32 %v367_v62, %v2580_v33 }
 0x104   :  { %v377_v16 = vpop.f32.mrf.mxu0 }
 0x105   :  { %v708_v22 = vmax.f32 %v454_v9, 0.0  ;;  %v457_v23 = vadd.f32 %v2576_v32, %v368_v44  ;;  %v375_v32 = vadd.f32 %v374_v50, %v2580_v33 }
 0x106   :  { %940 = vmatmul.bf16.gmra.mxu1 %v762_v17  ;;  %v511_v26 = vpop.f32.mrf.mxu2 }
 0x107   :  { %v512_v63 = vadd.f32 %v511_v26, %v423_v53  ;;  %v764_v15 = vpack.c.bf16 %v708_v22, %v706_v45  ;;  %v462_v53 = vadd.f32 %v2605_v5, %v373_v12  ;;  %v464_v28 = vadd.f32 %v2624_v30, %v375_v32  ;;  %v1934_v30 = vld [vmem:[%s3222_s3 + $0x78] sm:$0xff] }
 0x108   :  { %1011 = vmatpush.bf16.msrb.mxu3 %v1934_v30 }
 0x109   :  { %v754_v60 = vmax.f32 %v512_v63, 0.0  ;;  %v714_v43 = vmax.f32 %v462_v53, 0.0 }
 0x10b   :  { %v2658_v48 = vpop.f32.mrf.mxu1 }
 0x10c   :  { %v379_v29 = vpop.f32.mrf.mxu0 }
 0x10d   :  { %v380_v5 = vadd.f32 %v379_v29, %v2580_v33 }
 0x10e   :  { %v513_v8 = vpop.f32.mrf.mxu2 }
 0x10f   :  { %v514_v6 = vadd.f32 %v513_v8, %v425_v46 }
 0x111   :  { %v756_v38 = vmax.f32 %v514_v6, 0.0  ;;  %1793 = vmatmul.msk.bf16.gmra.mxu3 %vm279_vm2, %v2499_v51 }
 0x113   :  { %v2662_v24 = vpop.f32.mrf.mxu1  ;;  %564 = vmatmul.bf16.gmra.mxu2 %v2517_v27  ;;  %v2665_v34 = vpack.c.bf16 %v756_v38, %v754_v60  ;;  %v710_v27 = vmax.f32 %v457_v23, 0.0 }
 0x115   :  { %v766_v62 = vpack.c.bf16 %v712_v18, %v710_v27 }
 0x116   :  { %945 = vmatmul.bf16.gmra.mxu1 %v764_v15  ;;  %v2668_v20 = vpop.f32.mrf.mxu2 }
 0x11b   :  { %v2675_v36 = vpop.f32.mrf.mxu1 }
 0x11e   :  { %v2677_v61 = vpop.f32.mrf.mxu2 }
 0x121   :  { %1794 = vmatmul.msk.bf16.gmra.mxu3 %vm279_vm2, %v2539_v13  ;;  %v378_v13 = vadd.f32 %v377_v16, %v2580_v33 }
 0x122   :  { %v382_v57 = vpop.f32.mrf.mxu0 }
 0x123   :  { %v2679_v54 = vpop.f32.mrf.mxu1  ;;  %569 = vmatmul.bf16.gmra.mxu2 %v2556_v25  ;;  %v716_v25 = vmax.f32 %v464_v28, 0.0  ;;  %v467_v22 = vadd.f32 %v2628_v59, %v378_v13  ;;  %v383_v59 = vadd.f32 %v382_v57, %v2580_v33 }
 0x124   :  { %v629_v17 = vpop.f32.mrf.mxu3 }
 0x125   :  { %v768_v7 = vpack.c.bf16 %v716_v25, %v714_v43  ;;  %v718_v60 = vmax.f32 %v467_v22, 0.0  ;;  %v408_v22 = vadd.f32 %v2473_v42, %v2580_v33 }
 0x126   :  { %950 = vmatmul.bf16.gmra.mxu1 %v766_v62  ;;  %v2683_v51 = vpop.f32.mrf.mxu2  ;;  %v472_v62 = vadd.f32 %v2645_v40, %v383_v59 }
 0x128   :  { %v722_v12 = vmax.f32 %v472_v62, 0.0 }
 0x12a   :  { %v384_v46 = vpop.f32.mrf.mxu0 }
 0x12b   :  { %v2690_v26 = vpop.f32.mrf.mxu1  ;;  %v385_v23 = vadd.f32 %v384_v46, %v2580_v33 }
 0x12c   :  { %v631_v2 = vpop.f32.mrf.mxu3 }
 0x12e   :  { %v2692_v63 = vpop.f32.mrf.mxu2 }
 0x131   :  { %1795 = vmatmul.msk.bf16.gmra.mxu3 %vm279_vm2, %v2574_v31 }
 0x132   :  { %v387_v6 = vpop.f32.mrf.mxu0 }
 0x133   :  { %v2694_v9 = vpop.f32.mrf.mxu1  ;;  %574 = vmatmul.bf16.gmra.mxu2 %v2596_v3  ;;  %v469_v3 = vadd.f32 %v2641_v10, %v380_v5  ;;  %v388_v13 = vadd.f32 %v387_v6, %v2580_v33 }
 0x134   :  { %v634_v45 = vpop.f32.mrf.mxu3 }
 0x135   :  { %v720_v38 = vmax.f32 %v469_v3, 0.0  ;;  %v477_v6 = vadd.f32 %v2662_v24, %v388_v13 }
 0x136   :  { %955 = vmatmul.bf16.gmra.mxu1 %v768_v7  ;;  %v2698_v50 = vpop.f32.mrf.mxu2 }
 0x137   :  { %v770_v44 = vpack.c.bf16 %v720_v38, %v718_v60 }
 0x13a   :  { %v389_v27 = vpop.f32.mrf.mxu0 }
 0x13b   :  { %v2708_v8 = vpop.f32.mrf.mxu1  ;;  %v390_v30 = vadd.f32 %v389_v27, %v2580_v33 }
 0x13c   :  { %v636_v16 = vpop.f32.mrf.mxu3 }
 0x13e   :  { %v2710_v15 = vpop.f32.mrf.mxu2 }
 0x141   :  { %1796 = vmatmul.msk.bf16.gmra.mxu3 %vm279_vm2, %v2315_v37  ;;  %v1933_v37 = vld [vmem:[%s3222_s3 + $0x70] sm:$0xff] }
 0x142   :  { %v392_v43 = vpop.f32.mrf.mxu0  ;;  %1012 = vmatpush.bf16.msrb.mxu3 %v1933_v37 }
 0x143   :  { %v2712_v31 = vpop.f32.mrf.mxu1  ;;  %579 = vmatmul.bf16.gmra.mxu2 %v2619_v11  ;;  %v474_v11 = vadd.f32 %v2658_v48, %v385_v23 }
 0x144   :  { %v639_v29 = vpop.f32.mrf.mxu3 }
 0x145   :  { %v724_v32 = vmax.f32 %v474_v11, 0.0 }
 0x146   :  { %960 = vmatmul.bf16.gmra.mxu1 %v770_v44  ;;  %v540_v10 = vpop.f32.mrf.mxu2  ;;  %v479_v44 = vadd.f32 %v2675_v36, %v390_v30 }
 0x147   :  { %v541_v21 = vadd.f32 %v540_v10, %v2716_v1  ;;  %v772_v25 = vpack.c.bf16 %v724_v32, %v722_v12 }
 0x149   :  { %v630_v18 = vadd.f32 %v629_v17, %v541_v21 }
 0x14a   :  { %v394_v10 = vpop.f32.mrf.mxu0 }
 0x14b   :  { %v2725_v41 = vpop.f32.mrf.mxu1  ;;  %v707_v7 = vmax.f32 %v630_v18, 0.0  ;;  %v728_v18 = vmax.f32 %v479_v44, 0.0 }
 0x14c   :  { %v641_v17 = vpop.f32.mrf.mxu3 }
 0x14e   :  { %v542_v57 = vpop.f32.mrf.mxu2 }
 0x14f   :  { %v543_v53 = vadd.f32 %v542_v57, %v2716_v1 }
 0x151   :  { %v632_v28 = vadd.f32 %v631_v2, %v543_v53  ;;  %1797 = vmatmul.msk.bf16.gmra.mxu3 %vm279_vm2, %v2357_v56  ;;  %v726_v56 = vmax.f32 %v477_v6, 0.0  ;;  %v393_v53 = vadd.f32 %v392_v43, %v2580_v33 }
 0x152   :  { %v397_v24 = vpop.f32.mrf.mxu0 }
 0x153   :  { %v709_v40 = vmax.f32 %v632_v28, 0.0  ;;  %v496_v46 = vpop.f32.mrf.mxu1  ;;  %584 = vmatmul.bf16.gmra.mxu2 %v2176_v49  ;;  %v410_v49 = vadd.f32 %v2488_v47, %v2580_v33  ;;  %v774_v47 = vpack.c.bf16 %v728_v18, %v726_v56  ;;  %v395_v28 = vadd.f32 %v394_v10, %v2580_v33 }
 0x154   :  { %v644_v60 = vpop.f32.mrf.mxu3  ;;  %v497_v38 = vadd.f32 %v496_v46, %v408_v22  ;;  %v1932_v46 = vld [vmem:[%s3222_s3 + $0x68] sm:$0xff] }
 0x155   :  { %v2732_v48 = vpack.c.bf16 %v709_v40, %v707_v7  ;;  %v482_v40 = vadd.f32 %v2679_v54, %v393_v53  ;;  %1013 = vmatpush.bf16.msrb.mxu3 %v1932_v46 }
 0x156   :  { %965 = vmatmul.bf16.gmra.mxu1 %v772_v25  ;;  %v545_v5 = vpop.f32.mrf.mxu2  ;;  %v742_v21 = vmax.f32 %v497_v38, 0.0 }
 0x157   :  { %v546_v2 = vadd.f32 %v545_v5, %v2716_v1  ;;  %v730_v43 = vmax.f32 %v482_v40, 0.0 }
 0x159   :  { %v635_v3 = vadd.f32 %v634_v45, %v546_v2 }
 0x15a   :  { %v399_v2 = vpop.f32.mrf.mxu0 }
 0x15b   :  { %v498_v59 = vpop.f32.mrf.mxu1  ;;  %v711_v32 = vmax.f32 %v635_v3, 0.0  ;;  %v400_v6 = vadd.f32 %v399_v2, %v2580_v33 }
 0x15c   :  { %v499_v23 = vadd.f32 %v498_v59, %v410_v49  ;;  %v646_v12 = vpop.f32.mrf.mxu3 }
 0x15e   :  { %v744_v27 = vmax.f32 %v499_v23, 0.0  ;;  %v547_v62 = vpop.f32.mrf.mxu2 }
 0x15f   :  { %v548_v42 = vadd.f32 %v547_v62, %v2716_v1 }
 0x160   :  { %v2746_v45 = vpack.c.bf16 %v744_v27, %v742_v21  ;;  %v489_v21 = vadd.f32 %v2708_v8, %v400_v6 }
 0x161   :  { %v637_v11 = vadd.f32 %v636_v16, %v548_v42  ;;  %1798 = vmatmul.msk.bf16.gmra.mxu3 %vm279_vm2, %v2386_v4 }
 0x162   :  { %v402_v10 = vpop.f32.mrf.mxu0  ;;  %v736_v27 = vmax.f32 %v489_v21, 0.0 }
 0x163   :  { %v713_v57 = vmax.f32 %v637_v11, 0.0  ;;  %589 = vmatmul.bf16.gmra.mxu2 %v2195_v55  ;;  %v484_v55 = vadd.f32 %v2690_v26, %v395_v28  ;;  %v398_v26 = vadd.f32 %v397_v24, %v2580_v33  ;;  %v403_v8 = vadd.f32 %v402_v10, %v2580_v33 }
 0x164   :  { %v649_v7 = vpop.f32.mrf.mxu3 }
 0x165   :  { %v2749_v36 = vpack.c.bf16 %v713_v57, %v711_v32  ;;  %v732_v13 = vmax.f32 %v484_v55, 0.0  ;;  %v492_v28 = vadd.f32 %v2712_v31, %v403_v8 }
 0x166   :  { %970 = vmatmul.bf16.gmra.mxu1 %v774_v47  ;;  %v550_v37 = vpop.f32.mrf.mxu2 }
 0x167   :  { %v551_v16 = vadd.f32 %v550_v37, %v2716_v1  ;;  %v776_v3 = vpack.c.bf16 %v732_v13, %v730_v43  ;;  %v2783_v43 = vpop.f32.mrf.mxu1 }
 0x169   :  { %v640_v25 = vadd.f32 %v639_v29, %v551_v16 }
 0x16a   :  { %v404_v57 = vpop.f32.mrf.mxu0 }
 0x16b   :  { %v715_v29 = vmax.f32 %v640_v25, 0.0  ;;  %v405_v53 = vadd.f32 %v404_v57, %v2580_v33  ;;  %v738_v25 = vmax.f32 %v492_v28, 0.0 }
 0x16c   :  { %v651_v22 = vpop.f32.mrf.mxu3 }
 0x16e   :  { %v552_v5 = vpop.f32.mrf.mxu2 }
 0x16f   :  { %v553_v30 = vadd.f32 %v552_v5, %v2716_v1 }
 0x171   :  { %v642_v4 = vadd.f32 %v641_v17, %v553_v30  ;;  %v487_v17 = vadd.f32 %v2694_v9, %v398_v26 }
 0x173   :  { %v717_v49 = vmax.f32 %v642_v4, 0.0  ;;  %594 = vmatmul.bf16.gmra.mxu2 %v2223_v0  ;;  %v734_v56 = vmax.f32 %v487_v17, 0.0 }
 0x174   :  { %v654_v23 = vpop.f32.mrf.mxu3 }
 0x175   :  { %v2763_v54 = vpack.c.bf16 %v717_v49, %v715_v29  ;;  %v778_v42 = vpack.c.bf16 %v736_v27, %v734_v56 }
 0x176   :  { %975 = vmatmul.bf16.gmra.mxu1 %v776_v3  ;;  %v555_v38 = vpop.f32.mrf.mxu2  ;;  %v2790_v3 = vpop.f32.mrf.mxu1 }
 0x177   :  { %v556_v44 = vadd.f32 %v555_v38, %v2716_v1 }
 0x179   :  { %v645_v59 = vadd.f32 %v644_v60, %v556_v44  ;;  %v1931_v60 = vld [vmem:[%s3222_s3 + $0x60] sm:$0xff] }
 0x17a   :  { %1014 = vmatpush.bf16.msrb.mxu3 %v1931_v60 }
 0x17b   :  { %v719_v47 = vmax.f32 %v645_v59, 0.0 }
 0x17c   :  { %v656_v11 = vpop.f32.mrf.mxu3 }
 0x17e   :  { %v557_v0 = vpop.f32.mrf.mxu2  ;;  %v2798_v44 = vpop.f32.mrf.mxu1 }
 0x17f   :  { %v558_v18 = vadd.f32 %v557_v0, %v2716_v1 }
 0x181   :  { %v647_v62 = vadd.f32 %v646_v12, %v558_v18 }
 0x183   :  { %v721_v32 = vmax.f32 %v647_v62, 0.0  ;;  %599 = vmatmul.bf16.gmra.mxu2 %v2269_v19  ;;  %v494_v19 = vadd.f32 %v2725_v41, %v405_v53 }
 0x184   :  { %v659_v16 = vpop.f32.mrf.mxu3 }
 0x185   :  { %v2775_v9 = vpack.c.bf16 %v721_v32, %v719_v47  ;;  %v740_v40 = vmax.f32 %v494_v19, 0.0  ;;  %v1929_v32 = vld [vmem:[%s3222_s3 + $0x50] sm:$0xff] }
 0x186   :  { %980 = vmatmul.bf16.gmra.mxu1 %v778_v42  ;;  %v560_v24 = vpop.f32.mrf.mxu2  ;;  %v2804_v56 = vpop.f32.mrf.mxu1 }
 0x187   :  { %v561_v12 = vadd.f32 %v560_v24, %v2716_v1  ;;  %v780_v5 = vpack.c.bf16 %v740_v40, %v738_v25 }
 0x189   :  { %v650_v37 = vadd.f32 %v649_v7, %v561_v12 }
 0x18b   :  { %v723_v30 = vmax.f32 %v650_v37, 0.0 }
 0x18c   :  { %v661_v41 = vpop.f32.mrf.mxu3 }
 0x18e   :  { %v562_v55 = vpop.f32.mrf.mxu2  ;;  %v2816_v57 = vpop.f32.mrf.mxu1 }
 0x18f   :  { %v563_v46 = vadd.f32 %v562_v55, %v2716_v1 }
 0x191   :  { %v652_v13 = vadd.f32 %v651_v22, %v563_v46  ;;  %v1930_v22 = vld [vmem:[%s3222_s3 + $0x58] sm:$0xff] }
 0x192   :  { %1015 = vmatpush.bf16.msrb.mxu3 %v1930_v22 }
 0x193   :  { %v725_v33 = vmax.f32 %v652_v13, 0.0  ;;  %1783 = vmatmul.msk.bf16.vlgmr.msrb.gmra.mxu2 %vm279_vm2, %v2154_v39 }
 0x194   :  { %v664_v26 = vpop.f32.mrf.mxu3 }
 0x195   :  { %v2787_v7 = vpack.c.bf16 %v725_v33, %v723_v30 }
 0x196   :  { %985 = vmatmul.bf16.gmra.mxu1 %v780_v5  ;;  %v565_v31 = vpop.f32.mrf.mxu2  ;;  %1016 = vmatpush.bf16.msrb.mxu3 %v1929_v32  ;;  %v2819_v12 = vpop.f32.mrf.mxu1 }
 0x197   :  { %v566_v2 = vadd.f32 %v565_v31, %v2716_v1 }
 0x199   :  { %v655_v4 = vadd.f32 %v654_v23, %v566_v2 }
 0x19b   :  { %v727_v38 = vmax.f32 %v655_v4, 0.0 }
 0x19c   :  { %v666_v21 = vpop.f32.mrf.mxu3 }
 0x19e   :  { %v567_v29 = vpop.f32.mrf.mxu2  ;;  %v2825_v55 = vpop.f32.mrf.mxu1 }
 0x19f   :  { %v568_v49 = vadd.f32 %v567_v29, %v2716_v1  ;;  %v1942_v29 = vld [vmem:[%s3225_s5 + $0x38] sm:$0xff] }
 0x1a0   :  { %1216 = vmatpush.bf16.msrb.mxu0 %v1942_v29 }
 0x1a1   :  { %v657_v39 = vadd.f32 %v656_v11, %v568_v49 }
 0x1a3   :  { %v729_v6 = vmax.f32 %v657_v39, 0.0  ;;  %1784 = vmatmul.msk.bf16.gmra.mxu2 %vm279_vm2, %v2184_v52 }
 0x1a4   :  { %v669_v52 = vpop.f32.mrf.mxu3 }
 0x1a5   :  { %v2800_v59 = vpack.c.bf16 %v729_v6, %v727_v38 }
 0x1a6   :  { %990 = vmatmul.bf16.gmra.mxu1 %v2746_v45  ;;  %v570_v10 = vpop.f32.mrf.mxu2  ;;  %v2833_v2 = vpop.f32.mrf.mxu1 }
 0x1a7   :  { %v571_v23 = vadd.f32 %v570_v10, %v2716_v1 }
 0x1a9   :  { %v660_v17 = vadd.f32 %v659_v16, %v571_v23 }
 0x1ab   :  { %v731_v62 = vmax.f32 %v660_v17, 0.0 }
 0x1ac   :  { %v671_v24 = vpop.f32.mrf.mxu3 }
 0x1ae   :  { %v572_v27 = vpop.f32.mrf.mxu2 }
 0x1af   :  { %v573_v0 = vadd.f32 %v572_v27, %v2716_v1 }
 0x1b1   :  { %v662_v18 = vadd.f32 %v661_v41, %v573_v0  ;;  %v1928_v41 = vld [vmem:[%s3222_s3 + $0x48] sm:$0xff] }
 0x1b2   :  { %1017 = vmatpush.bf16.msrb.mxu3 %v1928_v41 }
 0x1b3   :  { %v733_v42 = vmax.f32 %v662_v18, 0.0  ;;  %1785 = vmatmul.msk.bf16.gmra.mxu2 %vm279_vm2, %v2203_v58  ;;  %v1927_v18 = vld [vmem:[%s3222_s3 + $0x40] sm:$0xff] }
 0x1b4   :  { %v674_v25 = vpop.f32.mrf.mxu3 }
 0x1b5   :  { %v2809_v11 = vpack.c.bf16 %v733_v42, %v731_v62 }
 0x1b6   :  { %995 = vmatmul.bf16.gmra.mxu1 %v2631_v35  ;;  %v575_v45 = vpop.f32.mrf.mxu2  ;;  %1018 = vmatpush.bf16.msrb.mxu3 %v1927_v18 }
 0x1b7   :  { %v576_v47 = vadd.f32 %v575_v45, %v2716_v1 }
 0x1b9   :  { %v665_v60 = vadd.f32 %v664_v26, %v576_v47 }
 0x1bb   :  { %v735_v37 = vmax.f32 %v665_v60, 0.0 }
 0x1bc   :  { %v676_v30 = vpop.f32.mrf.mxu3 }
 0x1be   :  { %v577_v8 = vpop.f32.mrf.mxu2 }
 0x1bf   :  { %v578_v58 = vadd.f32 %v577_v8, %v2716_v1 }
 0x1c1   :  { %v667_v53 = vadd.f32 %v666_v21, %v578_v58 }
 0x1c3   :  { %v737_v35 = vmax.f32 %v667_v53, 0.0 }
 0x1c4   :  { %v679_v26 = vpop.f32.mrf.mxu3 }
 0x1c5   :  { %v2821_v28 = vpack.c.bf16 %v737_v35, %v735_v37 }
 0x1c6   :  { %1000 = vmatmul.bf16.gmra.mxu1 %v2648_v14  ;;  %v580_v19 = vpop.f32.mrf.mxu2 }
 0x1c7   :  { %v581_v16 = vadd.f32 %v580_v19, %v2716_v1 }
 0x1c9   :  { %v670_v40 = vadd.f32 %v669_v52, %v581_v16  ;;  %v1941_v52 = vld [vmem:[%s3225_s5 + $0x30] sm:$0xff] }
 0x1ca   :  { %1217 = vmatpush.bf16.msrb.mxu0 %v1941_v52  ;;  %v531_v52 = vadd.f32 %v2683_v51, %v2716_v1  ;;  %v538_v51 = vadd.f32 %v2710_v15, %v2716_v1  ;;  %v1935_v15 = vld [vmem:[%s3225_s5] sm:$0xff] }
 0x1cb   :  { %v739_v33 = vmax.f32 %v670_v40, 0.0 }
 0x1ce   :  { %v582_v46 = vpop.f32.mrf.mxu2 }
 0x1cf   :  { %v583_v13 = vadd.f32 %v582_v46, %v2716_v1 }
 0x1d1   :  { %v672_v5 = vadd.f32 %v671_v24, %v583_v13 }
 0x1d3   :  { %v741_v31 = vmax.f32 %v672_v5, 0.0 }
 0x1d5   :  { %v2831_v14 = vpack.c.bf16 %v741_v31, %v739_v33  ;;  %v1940_v31 = vld [vmem:[%s3225_s5 + $0x28] sm:$0xff] }
 0x1d6   :  { %1005 = vmatmul.bf16.gmra.mxu1 %v2665_v34  ;;  %v585_v4 = vpop.f32.mrf.mxu2  ;;  %v681_v34 = vpop.f32.mrf.mxu3  ;;  %1218 = vmatpush.bf16.msrb.mxu0 %v1940_v31 }
 0x1d7   :  { %v586_v22 = vadd.f32 %v585_v4, %v2716_v1 }
 0x1d9   :  { %v675_v49 = vadd.f32 %v674_v25, %v586_v22 }
 0x1db   :  { %v743_v10 = vmax.f32 %v675_v49, 0.0 }
 0x1de   :  { %v587_v39 = vpop.f32.mrf.mxu2  ;;  %v684_v45 = vpop.f32.mrf.mxu3 }
 0x1df   :  { %v588_v38 = vadd.f32 %v587_v39, %v2716_v1 }
 0x1e1   :  { %v677_v6 = vadd.f32 %v676_v30, %v588_v38 }
 0x1e3   :  { %v745_v23 = vmax.f32 %v677_v6, 0.0  ;;  %v526_v6 = vadd.f32 %v2668_v20, %v2716_v1  ;;  %v533_v20 = vadd.f32 %v2692_v63, %v2716_v1 }
 0x1e5   :  { %v2841_v17 = vpack.c.bf16 %v745_v23, %v743_v10  ;;  %v528_v10 = vadd.f32 %v2677_v61, %v2716_v1 }
 0x1e6   :  { %v590_v21 = vpop.f32.mrf.mxu2  ;;  %v686_v37 = vpop.f32.mrf.mxu3 }
 0x1e7   :  { %v591_v27 = vadd.f32 %v590_v21, %v2716_v1 }
 0x1e9   :  { %v680_v0 = vadd.f32 %v679_v26, %v591_v27 }
 0x1eb   :  { %v747_v32 = vmax.f32 %v680_v0, 0.0 }
 0x1ee   :  { %v592_v62 = vpop.f32.mrf.mxu2  ;;  %v689_v46 = vpop.f32.mrf.mxu3 }
 0x1ef   :  { %v593_v42 = vadd.f32 %v592_v62, %v2716_v1  ;;  %v1939_v62 = vld [vmem:[%s3225_s5 + $0x20] sm:$0xff] }
 0x1f0   :  { %1219 = vmatpush.bf16.msrb.mxu0 %v1939_v62 }
 0x1f1   :  { %v682_v47 = vadd.f32 %v681_v34, %v593_v42 }
 0x1f3   :  { %v749_v60 = vmax.f32 %v682_v47, 0.0 }
 0x1f5   :  { %v2851_v8 = vpack.c.bf16 %v749_v60, %v747_v32 }
 0x1f6   :  { %v595_v24 = vpop.f32.mrf.mxu2  ;;  %v691_v4 = vpop.f32.mrf.mxu3 }
 0x1f7   :  { %v596_v58 = vadd.f32 %v595_v24, %v2716_v1 }
 0x1f9   :  { %v685_v53 = vadd.f32 %v684_v45, %v596_v58  ;;  %v1938_v58 = vld [vmem:[%s3225_s5 + $0x18] sm:$0xff] }
 0x1fa   :  { %1220 = vmatpush.bf16.msrb.mxu0 %v1938_v58 }
 0x1fb   :  { %v751_v25 = vmax.f32 %v685_v53, 0.0 }
 0x1fe   :  { %v597_v35 = vpop.f32.mrf.mxu2 }
 0x1ff   :  { %v598_v19 = vadd.f32 %v597_v35, %v2716_v1 }
 0x201   :  { %v687_v16 = vadd.f32 %v686_v37, %v598_v19  ;;  %v536_v37 = vadd.f32 %v2698_v50, %v2716_v1  ;;  %v1936_v50 = vld [vmem:[%s3225_s5 + $0x8] sm:$0xff] }
 0x203   :  { %v753_v40 = vmax.f32 %v687_v16, 0.0 }
 0x205   :  { %v2855_v13 = vpack.c.bf16 %v753_v40, %v751_v25 }
 0x206   :  { %v600_v5 = vpop.f32.mrf.mxu2 }
 0x207   :  { %v601_v30 = vadd.f32 %v600_v5, %v2716_v1 }
 0x209   :  { %v690_v33 = vadd.f32 %v689_v46, %v601_v30  ;;  %v1937_v46 = vld [vmem:[%s3225_s5 + $0x10] sm:$0xff] }
 0x20a   :  { %1221 = vmatpush.bf16.msrb.mxu0 %v1937_v46 }
 0x20b   :  { %v755_v49 = vmax.f32 %v690_v33, 0.0 }
 0x20e   :  { %v602_v41 = vpop.f32.mrf.mxu2  ;;  %1222 = vmatpush.bf16.msrb.mxu0 %v1936_v50 }
 0x20f   :  { %v603_v22 = vadd.f32 %v602_v41, %v2716_v1 }
 0x211   :  { %v692_v29 = vadd.f32 %v691_v4, %v603_v22 }
 0x212   :  { %1223 = vmatpush.bf16.msrb.mxu0 %v1935_v15 }
 0x213   :  { %v757_v26 = vmax.f32 %v692_v29, 0.0 }
 0x215   :  { %v2862_v39 = vpack.c.bf16 %v757_v26, %v755_v49 }
 0x216   :  { %v614_v38 = vpop.f32.mrf.mxu2 }
 0x217   :  { %v615_v23 = vadd.f32 %v614_v38, %v526_v6 }
 0x219   :  { %v695_v27 = vmax.f32 %v615_v23, 0.0 }
 0x21e   :  { %v616_v21 = vpop.f32.mrf.mxu2 }
 0x21f   :  { %v617_v34 = vadd.f32 %v616_v21, %v528_v10 }
 0x221   :  { %v697_v0 = vmax.f32 %v617_v34, 0.0 }
 0x223   :  { %v759_v18 = vpack.c.bf16 %v697_v0, %v695_v27 }
 0x225   :  { %1019 = vmatmul.bf16.vlgmr.msrb.gmra.mxu3 %v759_v18 }
 0x226   :  { %v619_v42 = vpop.f32.mrf.mxu2 }
 0x227   :  { %v620_v61 = vadd.f32 %v619_v42, %v531_v52 }
 0x229   :  { %v699_v32 = vmax.f32 %v620_v61, 0.0 }
 0x22e   :  { %v621_v45 = vpop.f32.mrf.mxu2 }
 0x22f   :  { %v622_v47 = vadd.f32 %v621_v45, %v533_v20 }
 0x231   :  { %v701_v60 = vmax.f32 %v622_v47, 0.0 }
 0x233   :  { %v761_v24 = vpack.c.bf16 %v701_v60, %v699_v32 }
 0x235   :  { %1024 = vmatmul.bf16.gmra.mxu3 %v761_v24 }
 0x236   :  { %v624_v53 = vpop.f32.mrf.mxu2 }
 0x237   :  { %v625_v63 = vadd.f32 %v624_v53, %v536_v37 }
 0x239   :  { %v703_v16 = vmax.f32 %v625_v63, 0.0 }
 0x23e   :  { %v626_v35 = vpop.f32.mrf.mxu2 }
 0x23f   :  { %v627_v19 = vadd.f32 %v626_v35, %v538_v51 }
 0x241   :  { %v705_v25 = vmax.f32 %v627_v19, 0.0 }
 0x243   :  { %v763_v40 = vpack.c.bf16 %v705_v25, %v703_v16 }
 0x245   :  { %1029 = vmatmul.bf16.gmra.mxu3 %v763_v40 }
 0x255   :  { %1034 = vmatmul.bf16.gmra.mxu3 %v2732_v48  ;;  %v2900_v48 = vld [vmem:[%s3224_s4] ss:$0 sm:$0xff] }
 0x256   :  { %v937_v4 = vadd.f32 %v2900_v48, %v2798_v44  ;;  %v942_v23 = vadd.f32 %v2900_v48, %v2816_v57  ;;  %v944_v44 = vadd.f32 %v2900_v48, %v2819_v12  ;;  %v947_v42 = vadd.f32 %v2900_v48, %v2825_v55 }
 0x257   :  { %v949_v57 = vadd.f32 %v2900_v48, %v2833_v2 }
 0x265   :  { %1039 = vmatmul.bf16.gmra.mxu3 %v2749_v36  ;;  %v932_v36 = vadd.f32 %v2900_v48, %v2783_v43  ;;  %v939_v43 = vadd.f32 %v2900_v48, %v2804_v56 }
 0x275   :  { %1044 = vmatmul.bf16.gmra.mxu3 %v2763_v54  ;;  %v934_v54 = vadd.f32 %v2900_v48, %v2790_v3 }
 0x285   :  { %1049 = vmatmul.bf16.gmra.mxu3 %v2775_v9 }
 0x295   :  { %1054 = vmatmul.bf16.gmra.mxu3 %v2787_v7 }
 0x2a5   :  { %1059 = vmatmul.bf16.gmra.mxu3 %v2800_v59  ;;  %v951_v59 = vpop.f32.mrf.mxu1 }
 0x2a6   :  { %v952_v24 = vadd.f32 %v2900_v48, %v951_v59 }
 0x2a8   :  { %v1020_v1 = vpop.f32.mrf.mxu3 }
 0x2a9   :  { %v1021_v5 = vadd.f32 %v1020_v1, %v932_v36 }
 0x2ab   :  { %v1100_v9 = vmax.f32 %v1021_v5, 0.0 }
 0x2ad   :  { %v953_v29 = vpop.f32.mrf.mxu1 }
 0x2ae   :  { %v954_v58 = vadd.f32 %v2900_v48, %v953_v29 }
 0x2b0   :  { %v1022_v30 = vpop.f32.mrf.mxu3 }
 0x2b1   :  { %v1023_v33 = vadd.f32 %v1022_v30, %v934_v54 }
 0x2b3   :  { %v1101_v31 = vmax.f32 %v1023_v33, 0.0 }
 0x2b5   :  { %v1132_v7 = vpack.c.bf16 %v1101_v31, %v1100_v9  ;;  %1064 = vmatmul.bf16.gmra.mxu3 %v2809_v11  ;;  %v956_v10 = vpop.f32.mrf.mxu1 }
 0x2b6   :  { %v957_v16 = vadd.f32 %v2900_v48, %v956_v10 }
 0x2b7   :  { %1224 = vmatmul.bf16.vlgmr.msrb.gmra.mxu0 %v1132_v7 }
 0x2b8   :  { %v1025_v41 = vpop.f32.mrf.mxu3 }
 0x2b9   :  { %v1026_v22 = vadd.f32 %v1025_v41, %v937_v4 }
 0x2bb   :  { %v1102_v26 = vmax.f32 %v1026_v22, 0.0 }
 0x2bd   :  { %v958_v18 = vpop.f32.mrf.mxu1 }
 0x2be   :  { %v959_v25 = vadd.f32 %v2900_v48, %v958_v18 }
 0x2c0   :  { %v1027_v3 = vpop.f32.mrf.mxu3 }
 0x2c1   :  { %v1028_v49 = vadd.f32 %v1027_v3, %v939_v43 }
 0x2c3   :  { %v1103_v38 = vmax.f32 %v1028_v49, 0.0 }
 0x2c5   :  { %1069 = vmatmul.bf16.gmra.mxu3 %v2821_v28  ;;  %v1133_v6 = vpack.c.bf16 %v1103_v38, %v1102_v26  ;;  %v961_v52 = vpop.f32.mrf.mxu1 }
 0x2c7   :  { %1229 = vmatmul.bf16.gmra.mxu0 %v1133_v6 }
 0x2c8   :  { %v1030_v11 = vpop.f32.mrf.mxu3 }
 0x2c9   :  { %v1031_v21 = vadd.f32 %v1030_v11, %v942_v23 }
 0x2cb   :  { %v1104_v27 = vmax.f32 %v1031_v21, 0.0 }
 0x2d0   :  { %v1032_v56 = vpop.f32.mrf.mxu3 }
 0x2d1   :  { %v1033_v34 = vadd.f32 %v1032_v56, %v944_v44 }
 0x2d3   :  { %v1105_v0 = vmax.f32 %v1033_v34, 0.0 }
 0x2d5   :  { %1074 = vmatmul.bf16.gmra.mxu3 %v2831_v14  ;;  %v1134_v62 = vpack.c.bf16 %v1105_v0, %v1104_v27  ;;  %v963_v14 = vpop.f32.mrf.mxu1  ;;  %v2938_v0 = vld [vmem:[%s3226_s6] ss:$0 sm:$0xff] }
 0x2d6   :  { %v964_v30 = vadd.f32 %v2900_v48, %v963_v14 }
 0x2d7   :  { %1234 = vmatmul.bf16.gmra.mxu0 %v1134_v62 }
 0x2d8   :  { %v1035_v28 = vpop.f32.mrf.mxu3 }
 0x2d9   :  { %v1036_v20 = vadd.f32 %v1035_v28, %v947_v42 }
 0x2db   :  { %v1106_v45 = vmax.f32 %v1036_v20, 0.0 }
 0x2dd   :  { %v966_v51 = vpop.f32.mrf.mxu1 }
 0x2e0   :  { %v1037_v12 = vpop.f32.mrf.mxu3 }
 0x2e1   :  { %v1038_v61 = vadd.f32 %v1037_v12, %v949_v57  ;;  %v2944_v57 = vld [vmem:[%s3227_s7] ss:$0 sm:$0xff] }
 0x2e3   :  { %v1107_v47 = vmax.f32 %v1038_v61, 0.0 }
 0x2e5   :  { %1079 = vmatmul.bf16.gmra.mxu3 %v2841_v17  ;;  %v1135_v32 = vpack.c.bf16 %v1107_v47, %v1106_v45  ;;  %v968_v17 = vpop.f32.mrf.mxu1 }
 0x2e6   :  { %v969_v29 = vadd.f32 %v2900_v48, %v968_v17 }
 0x2e7   :  { %1239 = vmatmul.bf16.gmra.mxu0 %v1135_v32 }
 0x2e8   :  { %v1040_v60 = vpop.f32.mrf.mxu3 }
 0x2e9   :  { %v1041_v55 = vadd.f32 %v1040_v60, %v952_v24 }
 0x2eb   :  { %v1108_v2 = vmax.f32 %v1041_v55, 0.0 }
 0x2ed   :  { %v971_v54 = vpop.f32.mrf.mxu1 }
 0x2ee   :  { %v972_v44 = vadd.f32 %v2900_v48, %v971_v54 }
 0x2f0   :  { %v1042_v53 = vpop.f32.mrf.mxu3 }
 0x2f1   :  { %v1043_v37 = vadd.f32 %v1042_v53, %v954_v58 }
 0x2f3   :  { %v1109_v63 = vmax.f32 %v1043_v37, 0.0 }
 0x2f5   :  { %v1136_v35 = vpack.c.bf16 %v1109_v63, %v1108_v2  ;;  %1084 = vmatmul.bf16.gmra.mxu3 %v2851_v8  ;;  %v962_v8 = vadd.f32 %v2900_v48, %v961_v52  ;;  %v973_v9 = vpop.f32.mrf.mxu1 }
 0x2f7   :  { %1244 = vmatmul.bf16.gmra.mxu0 %v1136_v35 }
 0x2f8   :  { %v1045_v19 = vpop.f32.mrf.mxu3 }
 0x2f9   :  { %v1046_v40 = vadd.f32 %v1045_v19, %v957_v16 }
 0x2fb   :  { %v1110_v15 = vmax.f32 %v1046_v40, 0.0 }
 0x2fd   :  { %v976_v22 = vpop.f32.mrf.mxu1 }
 0x2fe   :  { %v977_v14 = vadd.f32 %v2900_v48, %v976_v22 }
 0x300   :  { %v1047_v46 = vpop.f32.mrf.mxu3 }
 0x301   :  { %v1048_v50 = vadd.f32 %v1047_v46, %v959_v25 }
 0x303   :  { %v1111_v1 = vmax.f32 %v1048_v50, 0.0 }
 0x305   :  { %v1137_v36 = vpack.c.bf16 %v1111_v1, %v1110_v15  ;;  %1089 = vmatmul.bf16.gmra.mxu3 %v2855_v13  ;;  %v967_v13 = vadd.f32 %v2900_v48, %v966_v51  ;;  %v978_v11 = vpop.f32.mrf.mxu1 }
 0x306   :  { %v979_v24 = vadd.f32 %v2900_v48, %v978_v11 }
 0x307   :  { %1249 = vmatmul.bf16.gmra.mxu0 %v1137_v36 }
 0x308   :  { %v1050_v5 = vpop.f32.mrf.mxu3 }
 0x309   :  { %v1051_v33 = vadd.f32 %v1050_v5, %v962_v8 }
 0x30b   :  { %v1112_v59 = vmax.f32 %v1051_v33, 0.0 }
 0x30d   :  { %v981_v21 = vpop.f32.mrf.mxu1 }
 0x30e   :  { %v982_v54 = vadd.f32 %v2900_v48, %v981_v21 }
 0x310   :  { %v1052_v31 = vpop.f32.mrf.mxu3 }
 0x311   :  { %v1053_v7 = vadd.f32 %v1052_v31, %v964_v30 }
 0x313   :  { %v1113_v41 = vmax.f32 %v1053_v7, 0.0 }
 0x315   :  { %v1138_v4 = vpack.c.bf16 %v1113_v41, %v1112_v59  ;;  %1094 = vmatmul.bf16.gmra.mxu3 %v2862_v39  ;;  %v974_v39 = vadd.f32 %v2900_v48, %v973_v9  ;;  %v983_v12 = vpop.f32.mrf.mxu1 }
 0x316   :  { %v984_v8 = vadd.f32 %v2900_v48, %v983_v12 }
 0x317   :  { %1254 = vmatmul.bf16.gmra.mxu0 %v1138_v4 }
 0x318   :  { %v1055_v43 = vpop.f32.mrf.mxu3 }
 0x319   :  { %v1056_v3 = vadd.f32 %v1055_v43, %v967_v13 }
 0x31b   :  { %v1114_v38 = vmax.f32 %v1056_v3, 0.0 }
 0x31d   :  { %v986_v2 = vpop.f32.mrf.mxu1 }
 0x31e   :  { %v987_v11 = vadd.f32 %v2900_v48, %v986_v2 }
 0x320   :  { %v1057_v49 = vpop.f32.mrf.mxu3 }
 0x321   :  { %v1058_v26 = vadd.f32 %v1057_v49, %v969_v29 }
 0x323   :  { %v1115_v6 = vmax.f32 %v1058_v26, 0.0 }
 0x325   :  { %v1139_v10 = vpack.c.bf16 %v1115_v6, %v1114_v38  ;;  %v988_v1 = vpop.f32.mrf.mxu1 }
 0x327   :  { %1259 = vmatmul.bf16.gmra.mxu0 %v1139_v10 }
 0x328   :  { %v1060_v23 = vpop.f32.mrf.mxu3 }
 0x329   :  { %v1061_v56 = vadd.f32 %v1060_v23, %v972_v44  ;;  %v989_v23 = vadd.f32 %v2900_v48, %v988_v1 }
 0x32b   :  { %v1116_v18 = vmax.f32 %v1061_v56, 0.0 }
 0x32d   :  { %v991_v29 = vpop.f32.mrf.mxu1 }
 0x330   :  { %v1062_v34 = vpop.f32.mrf.mxu3 }
 0x331   :  { %v1063_v27 = vadd.f32 %v1062_v34, %v974_v39 }
 0x333   :  { %v1117_v62 = vmax.f32 %v1063_v27, 0.0 }
 0x334   :  { %v1225_v28 = vpop.f32.mrf.mxu0 }
 0x335   :  { %v1140_v42 = vpack.c.bf16 %v1117_v62, %v1116_v18  ;;  %v1226_v52 = vadd.f32 %v2938_v0, %v1225_v28  ;;  %v993_v39 = vpop.f32.mrf.mxu1 }
 0x337   :  { %v1305_v20 = vmax.f32 %v1226_v52, 0.0  ;;  %1264 = vmatmul.bf16.gmra.mxu0 %v1140_v42 }
 0x338   :  { %v1065_v61 = vpop.f32.mrf.mxu3 }
 0x339   :  { %v1341_v45 = vmul.f32 %v2944_v57, %v1305_v20  ;;  %v1066_v58 = vadd.f32 %v1065_v61, %v977_v14 }
 0x33b   :  { %v1374_v47 = vsel %vm1373_vm3, %v1341_v45, 0.0  ;;  %v1118_v63 = vmax.f32 %v1066_v58, 0.0  ;;  %v994_v58 = vadd.f32 %v2900_v48, %v993_v39 }
 0x33c   :  { %v1227_v32 = vpop.f32.mrf.mxu0  ;;  %1375 = vadd.xlane.f32.xlu0 %v1374_v47 }
 0x33d   :  { %v1228_v60 = vadd.f32 %v2938_v0, %v1227_v32  ;;  %v996_v47 = vpop.f32.mrf.mxu1 }
 0x33f   :  { %v1306_v55 = vmax.f32 %v1228_v60, 0.0  ;;  %v992_v60 = vadd.f32 %v2900_v48, %v991_v29 }
 0x340   :  { %v1067_v53 = vpop.f32.mrf.mxu3 }
 0x341   :  { %v1068_v37 = vadd.f32 %v1067_v53, %v979_v24  ;;  %v1342_v51 = vmul.f32 %v2944_v57, %v1306_v55 }
 0x343   :  { %v1119_v35 = vmax.f32 %v1068_v37, 0.0  ;;  %v1377_v19 = vsel %vm1373_vm3, %v1342_v51, 0.0 }
 0x344   :  { %v1230_v17 = vpop.f32.mrf.mxu0  ;;  %1378 = vadd.xlane.f32.xlu0 %v1377_v19 }
 0x345   :  { %v1141_v16 = vpack.c.bf16 %v1119_v35, %v1118_v63  ;;  %v1231_v25 = vadd.f32 %v2938_v0, %v1230_v17  ;;  %v998_v17 = vpop.f32.mrf.mxu1 }
 0x347   :  { %v1307_v40 = vmax.f32 %v1231_v25, 0.0  ;;  %1269 = vmatmul.bf16.gmra.mxu0 %v1141_v16 }
 0x348   :  { %v1070_v46 = vpop.f32.mrf.mxu3 }
 0x349   :  { %v1343_v50 = vmul.f32 %v2944_v57, %v1307_v40  ;;  %v1071_v30 = vadd.f32 %v1070_v46, %v982_v54  ;;  %v997_v54 = vadd.f32 %v2900_v48, %v996_v47 }
 0x34b   :  { %v1380_v15 = vsel %vm1373_vm3, %v1343_v50, 0.0  ;;  %v1120_v59 = vmax.f32 %v1071_v30, 0.0  ;;  %v999_v30 = vadd.f32 %v2900_v48, %v998_v17 }
 0x34c   :  { %v1232_v36 = vpop.f32.mrf.mxu0  ;;  %1381 = vadd.xlane.f32.xlu1 %v1380_v15 }
 0x34d   :  { %v1233_v5 = vadd.f32 %v2938_v0, %v1232_v36 }
 0x34f   :  { %v1308_v33 = vmax.f32 %v1233_v5, 0.0 }
 0x350   :  { %v1072_v9 = vpop.f32.mrf.mxu3 }
 0x351   :  { %v1073_v31 = vadd.f32 %v1072_v9, %v984_v8  ;;  %v1344_v7 = vmul.f32 %v2944_v57, %v1308_v33  ;;  %v1001_v8 = vpop.f32.mrf.mxu1 }
 0x353   :  { %v1121_v41 = vmax.f32 %v1073_v31, 0.0  ;;  %v1383_v4 = vsel %vm1373_vm3, %v1344_v7, 0.0 }
 0x354   :  { %v1235_v43 = vpop.f32.mrf.mxu0  ;;  %1384 = vadd.xlane.f32.xlu1 %v1383_v4 }
 0x355   :  { %v1142_v22 = vpack.c.bf16 %v1121_v41, %v1120_v59  ;;  %v1236_v13 = vadd.f32 %v2938_v0, %v1235_v43 }
 0x357   :  { %v1309_v3 = vmax.f32 %v1236_v13, 0.0  ;;  %1274 = vmatmul.bf16.gmra.mxu0 %v1142_v22 }
 0x358   :  { %v1075_v49 = vpop.f32.mrf.mxu3 }
 0x359   :  { %v1345_v26 = vmul.f32 %v2944_v57, %v1309_v3  ;;  %v1076_v44 = vadd.f32 %v1075_v49, %v987_v11  ;;  %v14_v49 = vstv %s3228_s8 }
 0x35a   :  { %15 = vst [vmem:[#allocation2] sm:$0x1] %v14_v49 }
 0x35b   :  { %v1386_v38 = vsel %vm1373_vm3, %v1345_v26, 0.0  ;;  %v1122_v18 = vmax.f32 %v1076_v44, 0.0  ;;  %v1003_v26 = vpop.f32.mrf.mxu1 }
 0x35c   :  { %v1237_v6 = vpop.f32.mrf.mxu0  ;;  %1387 = vadd.xlane.f32.xlu2 %v1386_v38 }
 0x35d   :  { %v1238_v10 = vadd.f32 %v2938_v0, %v1237_v6 }
 0x35f   :  { %v1310_v21 = vmax.f32 %v1238_v10, 0.0 }
 0x360   :  { %v1077_v56 = vpop.f32.mrf.mxu3 }
 0x361   :  { %v1078_v34 = vadd.f32 %v1077_v56, %v989_v23  ;;  %v1346_v27 = vmul.f32 %v2944_v57, %v1310_v21  ;;  %v1002_v23 = vadd.f32 %v2900_v48, %v1001_v8  ;;  %v1004_v21 = vadd.f32 %v2900_v48, %v1003_v26 }
 0x363   :  { %v1123_v62 = vmax.f32 %v1078_v34, 0.0  ;;  %v1389_v28 = vsel %vm1373_vm3, %v1346_v27, 0.0 }
 0x364   :  { %v1240_v42 = vpop.f32.mrf.mxu0  ;;  %1390 = vadd.xlane.f32.xlu2 %v1389_v28 }
 0x365   :  { %v1143_v52 = vpack.c.bf16 %v1123_v62, %v1122_v18  ;;  %v1241_v20 = vadd.f32 %v2938_v0, %v1240_v42  ;;  %v1006_v62 = vpop.f32.mrf.mxu1 }
 0x367   :  { %v1311_v12 = vmax.f32 %v1241_v20, 0.0  ;;  %1279 = vmatmul.bf16.gmra.mxu0 %v1143_v52 }
 0x368   :  { %v1080_v61 = vpop.f32.mrf.mxu3 }
 0x369   :  { %v1347_v45 = vmul.f32 %v2944_v57, %v1311_v12  ;;  %v1081_v55 = vadd.f32 %v1080_v61, %v992_v60 }
 0x36b   :  { %v1392_v32 = vsel %vm1373_vm3, %v1347_v45, 0.0  ;;  %v1124_v63 = vmax.f32 %v1081_v55, 0.0 }
 0x36c   :  { %v1242_v14 = vpop.f32.mrf.mxu0  ;;  %1393 = vadd.xlane.f32.xlu0 %v1392_v32 }
 0x36d   :  { %v1243_v24 = vadd.f32 %v2938_v0, %v1242_v14  ;;  %v1008_v60 = vpop.f32.mrf.mxu1 }
 0x36f   :  { %v1312_v53 = vmax.f32 %v1243_v24, 0.0 }
 0x370   :  { %v1082_v37 = vpop.f32.mrf.mxu3 }
 0x371   :  { %v1083_v51 = vadd.f32 %v1082_v37, %v994_v58  ;;  %v1348_v2 = vmul.f32 %v2944_v57, %v1312_v53  ;;  %v1007_v58 = vadd.f32 %v2900_v48, %v1006_v62  ;;  %v1009_v53 = vadd.f32 %v2900_v48, %v1008_v60 }
 0x373   :  { %v1125_v35 = vmax.f32 %v1083_v51, 0.0  ;;  %v1395_v19 = vsel %vm1373_vm3, %v1348_v2, 0.0 }
 0x374   :  { %v1245_v16 = vpop.f32.mrf.mxu0  ;;  %1396 = vadd.xlane.f32.xlu1 %v1395_v19 }
 0x375   :  { %v1144_v25 = vpack.c.bf16 %v1125_v35, %v1124_v63  ;;  %v1246_v40 = vadd.f32 %v2938_v0, %v1245_v16 }
 0x377   :  { %v1313_v46 = vmax.f32 %v1246_v40, 0.0  ;;  %1284 = vmatmul.bf16.gmra.mxu0 %v1144_v25 }
 0x378   :  { %v1085_v50 = vpop.f32.mrf.mxu3 }
 0x379   :  { %v1349_v15 = vmul.f32 %v2944_v57, %v1313_v46  ;;  %v1086_v33 = vadd.f32 %v1085_v50, %v997_v54 }
 0x37b   :  { %v1398_v1 = vsel %vm1373_vm3, %v1349_v15, 0.0  ;;  %v1126_v41 = vmax.f32 %v1086_v33, 0.0 }
 0x37c   :  { %v1247_v36 = vpop.f32.mrf.mxu0  ;;  %1399 = vadd.xlane.f32.xlu2 %v1398_v1 }
 0x37d   :  { %v1248_v5 = vadd.f32 %v2938_v0, %v1247_v36  ;;  %v3007_v36 = vld [vmem:[#allocation2] ss:$0 sm:$0xff] }
 0x37f   :  { %v1314_v9 = vmax.f32 %v1248_v5, 0.0 }
 0x380   :  { %v1087_v31 = vpop.f32.mrf.mxu3 }
 0x381   :  { %v1088_v7 = vadd.f32 %v1087_v31, %v999_v30  ;;  %v1350_v59 = vmul.f32 %v2944_v57, %v1314_v9 }
 0x383   :  { %v1127_v4 = vmax.f32 %v1088_v7, 0.0  ;;  %v1401_v43 = vsel %vm1373_vm3, %v1350_v59, 0.0 }
 0x384   :  { %v1250_v22 = vpop.f32.mrf.mxu0  ;;  %1402 = vadd.xlane.f32.xlu0 %v1401_v43 }
 0x385   :  { %v1145_v13 = vpack.c.bf16 %v1127_v4, %v1126_v41  ;;  %v1251_v29 = vadd.f32 %v2938_v0, %v1250_v22 }
 0x387   :  { %v1315_v3 = vmax.f32 %v1251_v29, 0.0  ;;  %1289 = vmatmul.bf16.gmra.mxu0 %v1145_v13 }
 0x388   :  { %v1090_v38 = vpop.f32.mrf.mxu3 }
 0x389   :  { %v1351_v6 = vmul.f32 %v2944_v57, %v1315_v3  ;;  %v1091_v39 = vadd.f32 %v1090_v38, %v1002_v23 }
 0x38b   :  { %v1404_v11 = vsel %vm1373_vm3, %v1351_v6, 0.0  ;;  %v1128_v28 = vmax.f32 %v1091_v39, 0.0 }
 0x38c   :  { %v1252_v10 = vpop.f32.mrf.mxu0  ;;  %1405 = vadd.xlane.f32.xlu1 %v1404_v11 }
 0x38d   :  { %v1253_v44 = vadd.f32 %v2938_v0, %v1252_v10 }
 0x38f   :  { %v1316_v56 = vmax.f32 %v1253_v44, 0.0 }
 0x390   :  { %v1092_v34 = vpop.f32.mrf.mxu3 }
 0x391   :  { %v1093_v27 = vadd.f32 %v1092_v34, %v1004_v21  ;;  %v1352_v18 = vmul.f32 %v2944_v57, %v1316_v56 }
 0x393   :  { %v1129_v42 = vmax.f32 %v1093_v27, 0.0  ;;  %v1407_v52 = vsel %vm1373_vm3, %v1352_v18, 0.0 }
 0x394   :  { %v1255_v20 = vpop.f32.mrf.mxu0  ;;  %1408 = vadd.xlane.f32.xlu2 %v1407_v52 }
 0x395   :  { %v1146_v12 = vpack.c.bf16 %v1129_v42, %v1128_v28  ;;  %v1256_v61 = vadd.f32 %v2938_v0, %v1255_v20 }
 0x397   :  { %v1317_v45 = vmax.f32 %v1256_v61, 0.0  ;;  %1294 = vmatmul.bf16.gmra.mxu0 %v1146_v12 }
 0x398   :  { %v1095_v47 = vpop.f32.mrf.mxu3 }
 0x399   :  { %v1353_v32 = vmul.f32 %v2944_v57, %v1317_v45  ;;  %v1096_v37 = vadd.f32 %v1095_v47, %v1007_v58 }
 0x39b   :  { %v1410_v14 = vsel %vm1373_vm3, %v1353_v32, 0.0  ;;  %v1130_v19 = vmax.f32 %v1096_v37, 0.0 }
 0x39c   :  { %v1257_v24 = vpop.f32.mrf.mxu0  ;;  %1411 = vadd.xlane.f32.xlu0 %v1410_v14 }
 0x39d   :  { %v1258_v55 = vadd.f32 %v2938_v0, %v1257_v24 }
 0x39f   :  { %v1318_v51 = vmax.f32 %v1258_v55, 0.0 }
 0x3a0   :  { %v1097_v2 = vpop.f32.mrf.mxu3 }
 0x3a1   :  { %v1098_v63 = vadd.f32 %v1097_v2, %v1009_v53  ;;  %v1354_v35 = vmul.f32 %v2944_v57, %v1318_v51 }
 0x3a3   :  { %v1131_v17 = vmax.f32 %v1098_v63, 0.0  ;;  %v1413_v16 = vsel %vm1373_vm3, %v1354_v35, 0.0 }
 0x3a4   :  { %v1260_v25 = vpop.f32.mrf.mxu0  ;;  %1414 = vadd.xlane.f32.xlu1 %v1413_v16 }
 0x3a5   :  { %v1147_v40 = vpack.c.bf16 %v1131_v17, %v1130_v19  ;;  %v1261_v46 = vadd.f32 %v2938_v0, %v1260_v25 }
 0x3a7   :  { %v1319_v50 = vmax.f32 %v1261_v46, 0.0  ;;  %1299 = vmatmul.bf16.gmra.mxu0 %v1147_v40 }
 0x3a9   :  { %v1355_v15 = vmul.f32 %v2944_v57, %v1319_v50 }
 0x3ab   :  { %v1416_v48 = vsel %vm1373_vm3, %v1355_v15, 0.0 }
 0x3ac   :  { %v1262_v1 = vpop.f32.mrf.mxu0  ;;  %1417 = vadd.xlane.f32.xlu2 %v1416_v48 }
 0x3ad   :  { %v1263_v54 = vadd.f32 %v2938_v0, %v1262_v1 }
 0x3af   :  { %v1320_v5 = vmax.f32 %v1263_v54, 0.0  ;;  %v1376_v8 = vpop.xlane.xlu0 %1375 }
 0x3b0   :  { %v1474_v30 = vadd.f32 %v3007_v36, %v1376_v8 }
 0x3b1   :  { %v1356_v33 = vmul.f32 %v2944_v57, %v1320_v5 }
 0x3b2   :  { %v1506_v9 = vmul.f32 0.5, %v1474_v30 }
 0x3b3   :  { %v1419_v31 = vsel %vm1373_vm3, %v1356_v33, 0.0 }
 0x3b4   :  { %1964 = vtanh.f32 %v1506_v9  ;;  %v1265_v7 = vpop.f32.mrf.mxu0  ;;  %1420 = vadd.xlane.f32.xlu0 %v1419_v31 }
 0x3b5   :  { %v1266_v59 = vadd.f32 %v2938_v0, %v1265_v7 }
 0x3b7   :  { %v1321_v41 = vmax.f32 %v1266_v59, 0.0  ;;  %v1379_v4 = vpop.xlane.xlu0 %1378 }
 0x3b8   :  { %v1475_v43 = vadd.f32 %v3007_v36, %v1379_v4 }
 0x3b9   :  { %v1357_v22 = vmul.f32 %v2944_v57, %v1321_v41 }
 0x3ba   :  { %v1965_v13 = vpop.eup %1964  ;;  %v1507_v29 = vmul.f32 0.5, %v1475_v43 }
 0x3bb   :  { %v1570_v3 = vmul.f32 0.5, %v1965_v13  ;;  %v1422_v49 = vsel %vm1373_vm3, %v1357_v22, 0.0 }
 0x3bc   :  { %1966 = vtanh.f32 %v1507_v29  ;;  %v1267_v26 = vpop.f32.mrf.mxu0  ;;  %1423 = vadd.xlane.f32.xlu1 %v1422_v49 }
 0x3bd   :  { %v1602_v38 = vadd.f32 0.5, %v1570_v3  ;;  %v1268_v6 = vadd.f32 %v2938_v0, %v1267_v26 }
 0x3bf   :  { %1635 = vst.msk [vmem:[%s3229_s9] sm:$0xff] %vm1634_vm4, %v1602_v38  ;;  %v1322_v11 = vmax.f32 %v1268_v6, 0.0  ;;  %v1382_v10 = vpop.xlane.xlu1 %1381 }
 0x3c0   :  { %v1476_v23 = vadd.f32 %v3007_v36, %v1382_v10 }
 0x3c1   :  { %v1358_v44 = vmul.f32 %v2944_v57, %v1322_v11 }
 0x3c2   :  { %v1967_v21 = vpop.eup %1966  ;;  %v1508_v39 = vmul.f32 0.5, %v1476_v23 }
 0x3c3   :  { %v1571_v56 = vmul.f32 0.5, %v1967_v21  ;;  %v1425_v34 = vsel %vm1373_vm3, %v1358_v44, 0.0 }
 0x3c4   :  { %1968 = vtanh.f32 %v1508_v39  ;;  %v1270_v27 = vpop.f32.mrf.mxu0  ;;  %1426 = vadd.xlane.f32.xlu2 %v1425_v34 }
 0x3c5   :  { %v1603_v18 = vadd.f32 0.5, %v1571_v56  ;;  %v1271_v62 = vadd.f32 %v2938_v0, %v1270_v27 }
 0x3c7   :  { %1636 = vst.msk [vmem:[%s3229_s9 + $0x8] sm:$0xff] %vm1634_vm4, %v1603_v18  ;;  %v1323_v28 = vmax.f32 %v1271_v62, 0.0  ;;  %v1385_v42 = vpop.xlane.xlu1 %1384 }
 0x3c8   :  { %v1477_v52 = vadd.f32 %v3007_v36, %v1385_v42 }
 0x3c9   :  { %v1359_v20 = vmul.f32 %v2944_v57, %v1323_v28 }
 0x3ca   :  { %v1969_v12 = vpop.eup %1968  ;;  %v1509_v61 = vmul.f32 0.5, %v1477_v52 }
 0x3cb   :  { %v1572_v45 = vmul.f32 0.5, %v1969_v12  ;;  %v1428_v47 = vsel %vm1373_vm3, %v1359_v20, 0.0 }
 0x3cc   :  { %1970 = vtanh.f32 %v1509_v61  ;;  %v1272_v32 = vpop.f32.mrf.mxu0  ;;  %1429 = vadd.xlane.f32.xlu0 %v1428_v47 }
 0x3cd   :  { %v1604_v14 = vadd.f32 0.5, %v1572_v45  ;;  %v1273_v60 = vadd.f32 %v2938_v0, %v1272_v32 }
 0x3cf   :  { %1637 = vst.msk [vmem:[%s3229_s9 + $0x10] sm:$0xff] %vm1634_vm4, %v1604_v14  ;;  %v1324_v24 = vmax.f32 %v1273_v60, 0.0  ;;  %v1388_v58 = vpop.xlane.xlu2 %1387 }
 0x3d0   :  { %v1478_v55 = vadd.f32 %v3007_v36, %v1388_v58 }
 0x3d1   :  { %v1360_v53 = vmul.f32 %v2944_v57, %v1324_v24 }
 0x3d2   :  { %v1971_v37 = vpop.eup %1970  ;;  %v1510_v51 = vmul.f32 0.5, %v1478_v55 }
 0x3d3   :  { %v1573_v2 = vmul.f32 0.5, %v1971_v37  ;;  %v1431_v63 = vsel %vm1373_vm3, %v1360_v53, 0.0 }
 0x3d4   :  { %1972 = vtanh.f32 %v1510_v51  ;;  %v1275_v35 = vpop.f32.mrf.mxu0  ;;  %1432 = vadd.xlane.f32.xlu1 %v1431_v63 }
 0x3d5   :  { %v1605_v19 = vadd.f32 0.5, %v1573_v2  ;;  %v1276_v17 = vadd.f32 %v2938_v0, %v1275_v35 }
 0x3d7   :  { %1638 = vst.msk [vmem:[%s3229_s9 + $0x18] sm:$0xff] %vm1634_vm4, %v1605_v19  ;;  %v1325_v16 = vmax.f32 %v1276_v17, 0.0  ;;  %v1391_v25 = vpop.xlane.xlu2 %1390 }
 0x3d8   :  { %v1479_v40 = vadd.f32 %v3007_v36, %v1391_v25 }
 0x3d9   :  { %v1361_v46 = vmul.f32 %v2944_v57, %v1325_v16 }
 0x3da   :  { %v1973_v50 = vpop.eup %1972  ;;  %v1511_v15 = vmul.f32 0.5, %v1479_v40 }
 0x3db   :  { %v1574_v48 = vmul.f32 0.5, %v1973_v50  ;;  %v1434_v1 = vsel %vm1373_vm3, %v1361_v46, 0.0 }
 0x3dc   :  { %1974 = vtanh.f32 %v1511_v15  ;;  %v1277_v54 = vpop.f32.mrf.mxu0  ;;  %1435 = vadd.xlane.f32.xlu2 %v1434_v1 }
 0x3dd   :  { %v1606_v5 = vadd.f32 0.5, %v1574_v48  ;;  %v1278_v8 = vadd.f32 %v2938_v0, %v1277_v54 }
 0x3df   :  { %1639 = vst.msk [vmem:[%s3229_s9 + $0x20] sm:$0xff] %vm1634_vm4, %v1606_v5  ;;  %v1326_v30 = vmax.f32 %v1278_v8, 0.0  ;;  %v1394_v33 = vpop.xlane.xlu0 %1393 }
 0x3e0   :  { %v1480_v9 = vadd.f32 %v3007_v36, %v1394_v33 }
 0x3e1   :  { %v1362_v31 = vmul.f32 %v2944_v57, %v1326_v30 }
 0x3e2   :  { %v1975_v7 = vpop.eup %1974  ;;  %v1512_v59 = vmul.f32 0.5, %v1480_v9 }
 0x3e3   :  { %v1575_v41 = vmul.f32 0.5, %v1975_v7  ;;  %v1437_v4 = vsel %vm1373_vm3, %v1362_v31, 0.0 }
 0x3e4   :  { %1976 = vtanh.f32 %v1512_v59  ;;  %v1280_v43 = vpop.f32.mrf.mxu0  ;;  %1438 = vadd.xlane.f32.xlu0 %v1437_v4 }
 0x3e5   :  { %v1607_v22 = vadd.f32 0.5, %v1575_v41  ;;  %v1281_v13 = vadd.f32 %v2938_v0, %v1280_v43 }
 0x3e7   :  { %1640 = vst.msk [vmem:[%s3229_s9 + $0x28] sm:$0xff] %vm1634_vm4, %v1607_v22  ;;  %v1327_v29 = vmax.f32 %v1281_v13, 0.0  ;;  %v1397_v3 = vpop.xlane.xlu1 %1396 }
 0x3e8   :  { %v1481_v49 = vadd.f32 %v3007_v36, %v1397_v3 }
 0x3e9   :  { %v1363_v26 = vmul.f32 %v2944_v57, %v1327_v29 }
 0x3ea   :  { %v1977_v38 = vpop.eup %1976  ;;  %v1513_v6 = vmul.f32 0.5, %v1481_v49 }
 0x3eb   :  { %v1576_v11 = vmul.f32 0.5, %v1977_v38  ;;  %v1440_v10 = vsel %vm1373_vm3, %v1363_v26, 0.0 }
 0x3ec   :  { %1978 = vtanh.f32 %v1513_v6  ;;  %v1282_v23 = vpop.f32.mrf.mxu0  ;;  %1441 = vadd.xlane.f32.xlu1 %v1440_v10 }
 0x3ed   :  { %v1608_v44 = vadd.f32 0.5, %v1576_v11  ;;  %v1283_v21 = vadd.f32 %v2938_v0, %v1282_v23 }
 0x3ef   :  { %1641 = vst.msk [vmem:[%s3229_s9 + $0x30] sm:$0xff] %vm1634_vm4, %v1608_v44  ;;  %v1328_v39 = vmax.f32 %v1283_v21, 0.0  ;;  %v1400_v56 = vpop.xlane.xlu2 %1399 }
 0x3f0   :  { %v1482_v34 = vadd.f32 %v3007_v36, %v1400_v56 }
 0x3f1   :  { %v1364_v27 = vmul.f32 %v2944_v57, %v1328_v39 }
 0x3f2   :  { %v1979_v18 = vpop.eup %1978  ;;  %v1514_v62 = vmul.f32 0.5, %v1482_v34 }
 0x3f3   :  { %v1577_v28 = vmul.f32 0.5, %v1979_v18  ;;  %v1443_v42 = vsel %vm1373_vm3, %v1364_v27, 0.0 }
 0x3f4   :  { %1980 = vtanh.f32 %v1514_v62  ;;  %v1285_v52 = vpop.f32.mrf.mxu0  ;;  %1444 = vadd.xlane.f32.xlu2 %v1443_v42 }
 0x3f5   :  { %v1609_v20 = vadd.f32 0.5, %v1577_v28  ;;  %v1286_v12 = vadd.f32 %v2938_v0, %v1285_v52 }
 0x3f7   :  { %1642 = vst.msk [vmem:[%s3229_s9 + $0x38] sm:$0xff] %vm1634_vm4, %v1609_v20  ;;  %v1329_v61 = vmax.f32 %v1286_v12, 0.0  ;;  %v1403_v45 = vpop.xlane.xlu0 %1402 }
 0x3f8   :  { %v1483_v47 = vadd.f32 %v3007_v36, %v1403_v45 }
 0x3f9   :  { %v1365_v32 = vmul.f32 %v2944_v57, %v1329_v61 }
 0x3fa   :  { %v1981_v14 = vpop.eup %1980  ;;  %v1515_v60 = vmul.f32 0.5, %v1483_v47 }
 0x3fb   :  { %v1578_v24 = vmul.f32 0.5, %v1981_v14  ;;  %v1446_v58 = vsel %vm1373_vm3, %v1365_v32, 0.0 }
 0x3fc   :  { %1982 = vtanh.f32 %v1515_v60  ;;  %v1287_v55 = vpop.f32.mrf.mxu0  ;;  %1447 = vadd.xlane.f32.xlu0 %v1446_v58 }
 0x3fd   :  { %v1610_v53 = vadd.f32 0.5, %v1578_v24  ;;  %v1288_v37 = vadd.f32 %v2938_v0, %v1287_v55 }
 0x3ff   :  { %1643 = vst.msk [vmem:[%s3229_s9 + $0x40] sm:$0xff] %vm1634_vm4, %v1610_v53  ;;  %v1330_v51 = vmax.f32 %v1288_v37, 0.0  ;;  %v1406_v2 = vpop.xlane.xlu1 %1405 }
 0x400   :  { %v1484_v63 = vadd.f32 %v3007_v36, %v1406_v2 }
 0x401   :  { %v1366_v35 = vmul.f32 %v2944_v57, %v1330_v51 }
 0x402   :  { %v1983_v19 = vpop.eup %1982  ;;  %v1516_v17 = vmul.f32 0.5, %v1484_v63 }
 0x403   :  { %v1579_v16 = vmul.f32 0.5, %v1983_v19  ;;  %v1449_v25 = vsel %vm1373_vm3, %v1366_v35, 0.0 }
 0x404   :  { %1984 = vtanh.f32 %v1516_v17  ;;  %v1290_v40 = vpop.f32.mrf.mxu0  ;;  %1450 = vadd.xlane.f32.xlu1 %v1449_v25 }
 0x405   :  { %v1611_v46 = vadd.f32 0.5, %v1579_v16  ;;  %v1291_v50 = vadd.f32 %v2938_v0, %v1290_v40 }
 0x407   :  { %1644 = vst.msk [vmem:[%s3229_s9 + $0x48] sm:$0xff] %vm1634_vm4, %v1611_v46  ;;  %v1331_v15 = vmax.f32 %v1291_v50, 0.0  ;;  %v1409_v48 = vpop.xlane.xlu2 %1408 }
 0x408   :  { %v1485_v1 = vadd.f32 %v3007_v36, %v1409_v48 }
 0x409   :  { %v1367_v54 = vmul.f32 %v2944_v57, %v1331_v15 }
 0x40a   :  { %v1985_v5 = vpop.eup %1984  ;;  %v1517_v8 = vmul.f32 0.5, %v1485_v1 }
 0x40b   :  { %v1580_v30 = vmul.f32 0.5, %v1985_v5  ;;  %v1452_v33 = vsel %vm1373_vm3, %v1367_v54, 0.0 }
 0x40c   :  { %1986 = vtanh.f32 %v1517_v8  ;;  %v1292_v9 = vpop.f32.mrf.mxu0  ;;  %1453 = vadd.xlane.f32.xlu2 %v1452_v33 }
 0x40d   :  { %v1612_v31 = vadd.f32 0.5, %v1580_v30  ;;  %v1293_v7 = vadd.f32 %v2938_v0, %v1292_v9 }
 0x40f   :  { %1645 = vst.msk [vmem:[%s3229_s9 + $0x50] sm:$0xff] %vm1634_vm4, %v1612_v31  ;;  %v1332_v59 = vmax.f32 %v1293_v7, 0.0  ;;  %v1412_v41 = vpop.xlane.xlu0 %1411 }
 0x410   :  { %v1486_v4 = vadd.f32 %v3007_v36, %v1412_v41 }
 0x411   :  { %v1368_v43 = vmul.f32 %v2944_v57, %v1332_v59 }
 0x412   :  { %v1987_v22 = vpop.eup %1986  ;;  %v1518_v13 = vmul.f32 0.5, %v1486_v4 }
 0x413   :  { %v1581_v29 = vmul.f32 0.5, %v1987_v22  ;;  %v1455_v3 = vsel %vm1373_vm3, %v1368_v43, 0.0 }
 0x414   :  { %1988 = vtanh.f32 %v1518_v13  ;;  %v1295_v49 = vpop.f32.mrf.mxu0  ;;  %1456 = vadd.xlane.f32.xlu0 %v1455_v3 }
 0x415   :  { %v1613_v26 = vadd.f32 0.5, %v1581_v29  ;;  %v1296_v38 = vadd.f32 %v2938_v0, %v1295_v49 }
 0x417   :  { %1646 = vst.msk [vmem:[%s3229_s9 + $0x58] sm:$0xff] %vm1634_vm4, %v1613_v26  ;;  %v1333_v6 = vmax.f32 %v1296_v38, 0.0  ;;  %v1415_v11 = vpop.xlane.xlu1 %1414 }
 0x418   :  { %v1487_v10 = vadd.f32 %v3007_v36, %v1415_v11 }
 0x419   :  { %v1369_v23 = vmul.f32 %v2944_v57, %v1333_v6 }
 0x41a   :  { %v1989_v44 = vpop.eup %1988  ;;  %v1519_v21 = vmul.f32 0.5, %v1487_v10 }
 0x41b   :  { %v1582_v39 = vmul.f32 0.5, %v1989_v44  ;;  %v1458_v56 = vsel %vm1373_vm3, %v1369_v23, 0.0 }
 0x41c   :  { %1990 = vtanh.f32 %v1519_v21  ;;  %v1297_v34 = vpop.f32.mrf.mxu0  ;;  %1459 = vadd.xlane.f32.xlu1 %v1458_v56 }
 0x41d   :  { %v1614_v27 = vadd.f32 0.5, %v1582_v39  ;;  %v1298_v18 = vadd.f32 %v2938_v0, %v1297_v34 }
 0x41f   :  { %1647 = vst.msk [vmem:[%s3229_s9 + $0x60] sm:$0xff] %vm1634_vm4, %v1614_v27  ;;  %v1334_v62 = vmax.f32 %v1298_v18, 0.0  ;;  %v1418_v28 = vpop.xlane.xlu2 %1417 }
 0x420   :  { %v1488_v42 = vadd.f32 %v3007_v36, %v1418_v28 }
 0x421   :  { %v1370_v52 = vmul.f32 %v2944_v57, %v1334_v62 }
 0x422   :  { %v1991_v20 = vpop.eup %1990  ;;  %v1520_v12 = vmul.f32 0.5, %v1488_v42 }
 0x423   :  { %v1583_v61 = vmul.f32 0.5, %v1991_v20  ;;  %v1461_v45 = vsel %vm1373_vm3, %v1370_v52, 0.0 }
 0x424   :  { %1992 = vtanh.f32 %v1520_v12  ;;  %v1300_v47 = vpop.f32.mrf.mxu0  ;;  %1462 = vadd.xlane.f32.xlu2 %v1461_v45 }
 0x425   :  { %v1615_v32 = vadd.f32 0.5, %v1583_v61  ;;  %v1301_v14 = vadd.f32 %v2938_v0, %v1300_v47 }
 0x427   :  { %1648 = vst.msk [vmem:[%s3229_s9 + $0x68] sm:$0xff] %vm1634_vm4, %v1615_v32  ;;  %v1335_v60 = vmax.f32 %v1301_v14, 0.0  ;;  %v1421_v24 = vpop.xlane.xlu0 %1420 }
 0x428   :  { %v1489_v58 = vadd.f32 %v3007_v36, %v1421_v24 }
 0x429   :  { %v1371_v55 = vmul.f32 %v2944_v57, %v1335_v60 }
 0x42a   :  { %v1993_v53 = vpop.eup %1992  ;;  %v1521_v37 = vmul.f32 0.5, %v1489_v58 }
 0x42b   :  { %v1584_v51 = vmul.f32 0.5, %v1993_v53  ;;  %v1464_v2 = vsel %vm1373_vm3, %v1371_v55, 0.0 }
 0x42c   :  { %1994 = vtanh.f32 %v1521_v37  ;;  %v1302_v63 = vpop.f32.mrf.mxu0  ;;  %1465 = vadd.xlane.f32.xlu0 %v1464_v2 }
 0x42d   :  { %v1616_v35 = vadd.f32 0.5, %v1584_v51  ;;  %v1303_v19 = vadd.f32 %v2938_v0, %v1302_v63 }
 0x42f   :  { %1649 = vst.msk [vmem:[%s3229_s9 + $0x70] sm:$0xff] %vm1634_vm4, %v1616_v35  ;;  %v1336_v17 = vmax.f32 %v1303_v19, 0.0  ;;  %v1424_v16 = vpop.xlane.xlu1 %1423 }
 0x430   :  { %v1490_v25 = vadd.f32 %v3007_v36, %v1424_v16 }
 0x431   :  { %v1372_v40 = vmul.f32 %v2944_v57, %v1336_v17 }
 0x432   :  { %v1995_v46 = vpop.eup %1994  ;;  %v1522_v50 = vmul.f32 0.5, %v1490_v25 }
 0x433   :  { %v1585_v15 = vmul.f32 0.5, %v1995_v46  ;;  %v1467_v48 = vsel %vm1373_vm3, %v1372_v40, 0.0 }
 0x434   :  { %1996 = vtanh.f32 %v1522_v50  ;;  %1468 = vadd.xlane.f32.xlu1 %v1467_v48 }
 0x435   :  { %v1617_v1 = vadd.f32 0.5, %v1585_v15 }
 0x437   :  { %1650 = vst.msk [vmem:[%s3229_s9 + $0x78] sm:$0xff] %vm1634_vm4, %v1617_v1  ;;  %v1427_v0 = vpop.xlane.xlu2 %1426 }
 0x438   :  { %v1491_v54 = vadd.f32 %v3007_v36, %v1427_v0 }
 0x43a   :  { %v1997_v5 = vpop.eup %1996  ;;  %v1523_v8 = vmul.f32 0.5, %v1491_v54 }
 0x43b   :  { %v1586_v30 = vmul.f32 0.5, %v1997_v5 }
 0x43c   :  { %1998 = vtanh.f32 %v1523_v8 }
 0x43d   :  { %v1618_v57 = vadd.f32 0.5, %v1586_v30 }
 0x43f   :  { %1651 = vst.msk [vmem:[%s3229_s9 + $0x80] sm:$0xff] %vm1634_vm4, %v1618_v57  ;;  %v1430_v33 = vpop.xlane.xlu0 %1429 }
 0x440   :  { %v1492_v9 = vadd.f32 %v3007_v36, %v1430_v33 }
 0x442   :  { %v1999_v31 = vpop.eup %1998  ;;  %v1524_v7 = vmul.f32 0.5, %v1492_v9 }
 0x443   :  { %v1587_v59 = vmul.f32 0.5, %v1999_v31 }
 0x444   :  { %2000 = vtanh.f32 %v1524_v7 }
 0x445   :  { %v1619_v41 = vadd.f32 0.5, %v1587_v59 }
 0x447   :  { %1652 = vst.msk [vmem:[%s3229_s9 + $0x88] sm:$0xff] %vm1634_vm4, %v1619_v41  ;;  %v1433_v4 = vpop.xlane.xlu1 %1432 }
 0x448   :  { %v1493_v43 = vadd.f32 %v3007_v36, %v1433_v4 }
 0x44a   :  { %v2001_v22 = vpop.eup %2000  ;;  %v1525_v13 = vmul.f32 0.5, %v1493_v43 }
 0x44b   :  { %v1588_v29 = vmul.f32 0.5, %v2001_v22 }
 0x44c   :  { %2002 = vtanh.f32 %v1525_v13 }
 0x44d   :  { %v1620_v3 = vadd.f32 0.5, %v1588_v29 }
 0x44f   :  { %1653 = vst.msk [vmem:[%s3229_s9 + $0x90] sm:$0xff] %vm1634_vm4, %v1620_v3  ;;  %v1436_v49 = vpop.xlane.xlu2 %1435 }
 0x450   :  { %v1494_v26 = vadd.f32 %v3007_v36, %v1436_v49 }
 0x452   :  { %v2003_v38 = vpop.eup %2002  ;;  %v1526_v6 = vmul.f32 0.5, %v1494_v26 }
 0x453   :  { %v1589_v11 = vmul.f32 0.5, %v2003_v38 }
 0x454   :  { %2004 = vtanh.f32 %v1526_v6 }
 0x455   :  { %v1621_v10 = vadd.f32 0.5, %v1589_v11 }
 0x457   :  { %1654 = vst.msk [vmem:[%s3229_s9 + $0x98] sm:$0xff] %vm1634_vm4, %v1621_v10  ;;  %v1439_v23 = vpop.xlane.xlu0 %1438 }
 0x458   :  { %v1495_v44 = vadd.f32 %v3007_v36, %v1439_v23 }
 0x45a   :  { %v2005_v21 = vpop.eup %2004  ;;  %v1527_v39 = vmul.f32 0.5, %v1495_v44 }
 0x45b   :  { %v1590_v56 = vmul.f32 0.5, %v2005_v21 }
 0x45c   :  { %2006 = vtanh.f32 %v1527_v39 }
 0x45d   :  { %v1622_v34 = vadd.f32 0.5, %v1590_v56 }
 0x45f   :  { %1655 = vst.msk [vmem:[%s3229_s9 + $0xa0] sm:$0xff] %vm1634_vm4, %v1622_v34  ;;  %v1442_v27 = vpop.xlane.xlu1 %1441 }
 0x460   :  { %v1496_v18 = vadd.f32 %v3007_v36, %v1442_v27 }
 0x462   :  { %v2007_v62 = vpop.eup %2006  ;;  %v1528_v28 = vmul.f32 0.5, %v1496_v18 }
 0x463   :  { %v1591_v42 = vmul.f32 0.5, %v2007_v62 }
 0x464   :  { %2008 = vtanh.f32 %v1528_v28 }
 0x465   :  { %v1623_v52 = vadd.f32 0.5, %v1591_v42 }
 0x467   :  { %1656 = vst.msk [vmem:[%s3229_s9 + $0xa8] sm:$0xff] %vm1634_vm4, %v1623_v52  ;;  %v1445_v20 = vpop.xlane.xlu2 %1444 }
 0x468   :  { %v1497_v12 = vadd.f32 %v3007_v36, %v1445_v20 }
 0x46a   :  { %v2009_v61 = vpop.eup %2008  ;;  %v1529_v45 = vmul.f32 0.5, %v1497_v12 }
 0x46b   :  { %v1592_v47 = vmul.f32 0.5, %v2009_v61 }
 0x46c   :  { %2010 = vtanh.f32 %v1529_v45 }
 0x46d   :  { %v1624_v32 = vadd.f32 0.5, %v1592_v47 }
 0x46f   :  { %1657 = vst.msk [vmem:[%s3229_s9 + $0xb0] sm:$0xff] %vm1634_vm4, %v1624_v32  ;;  %v1448_v14 = vpop.xlane.xlu0 %1447 }
 0x470   :  { %v1498_v60 = vadd.f32 %v3007_v36, %v1448_v14 }
 0x472   :  { %v2011_v24 = vpop.eup %2010  ;;  %v1530_v58 = vmul.f32 0.5, %v1498_v60 }
 0x473   :  { %v1593_v55 = vmul.f32 0.5, %v2011_v24 }
 0x474   :  { %2012 = vtanh.f32 %v1530_v58 }
 0x475   :  { %v1625_v53 = vadd.f32 0.5, %v1593_v55 }
 0x477   :  { %1658 = vst.msk [vmem:[%s3229_s9 + $0xb8] sm:$0xff] %vm1634_vm4, %v1625_v53  ;;  %v1451_v37 = vpop.xlane.xlu1 %1450 }
 0x478   :  { %v1499_v51 = vadd.f32 %v3007_v36, %v1451_v37 }
 0x47a   :  { %v2013_v2 = vpop.eup %2012  ;;  %v1531_v63 = vmul.f32 0.5, %v1499_v51 }
 0x47b   :  { %v1594_v35 = vmul.f32 0.5, %v2013_v2 }
 0x47c   :  { %2014 = vtanh.f32 %v1531_v63 }
 0x47d   :  { %v1626_v19 = vadd.f32 0.5, %v1594_v35 }
 0x47f   :  { %1659 = vst.msk [vmem:[%s3229_s9 + $0xc0] sm:$0xff] %vm1634_vm4, %v1626_v19  ;;  %v1454_v17 = vpop.xlane.xlu2 %1453 }
 0x480   :  { %v1500_v16 = vadd.f32 %v3007_v36, %v1454_v17 }
 0x482   :  { %v2015_v25 = vpop.eup %2014  ;;  %v1532_v40 = vmul.f32 0.5, %v1500_v16 }
 0x483   :  { %v1595_v46 = vmul.f32 0.5, %v2015_v25 }
 0x484   :  { %2016 = vtanh.f32 %v1532_v40 }
 0x485   :  { %v1627_v50 = vadd.f32 0.5, %v1595_v46 }
 0x487   :  { %1660 = vst.msk [vmem:[%s3229_s9 + $0xc8] sm:$0xff] %vm1634_vm4, %v1627_v50  ;;  %v1457_v15 = vpop.xlane.xlu0 %1456 }
 0x488   :  { %v1501_v48 = vadd.f32 %v3007_v36, %v1457_v15 }
 0x48a   :  { %v2017_v1 = vpop.eup %2016  ;;  %v1533_v0 = vmul.f32 0.5, %v1501_v48 }
 0x48b   :  { %v1596_v54 = vmul.f32 0.5, %v2017_v1 }
 0x48c   :  { %2018 = vtanh.f32 %v1533_v0 }
 0x48d   :  { %v1628_v5 = vadd.f32 0.5, %v1596_v54 }
 0x48f   :  { %1661 = vst.msk [vmem:[%s3229_s9 + $0xd0] sm:$0xff] %vm1634_vm4, %v1628_v5  ;;  %v1460_v8 = vpop.xlane.xlu1 %1459 }
 0x490   :  { %v1502_v30 = vadd.f32 %v3007_v36, %v1460_v8 }
 0x492   :  { %v2019_v57 = vpop.eup %2018  ;;  %v1534_v33 = vmul.f32 0.5, %v1502_v30 }
 0x493   :  { %v1597_v9 = vmul.f32 0.5, %v2019_v57 }
 0x494   :  { %2020 = vtanh.f32 %v1534_v33 }
 0x495   :  { %v1629_v31 = vadd.f32 0.5, %v1597_v9 }
 0x497   :  { %1662 = vst.msk [vmem:[%s3229_s9 + $0xd8] sm:$0xff] %vm1634_vm4, %v1629_v31  ;;  %v1463_v7 = vpop.xlane.xlu2 %1462 }
 0x498   :  { %v1503_v59 = vadd.f32 %v3007_v36, %v1463_v7 }
 0x49a   :  { %v2021_v41 = vpop.eup %2020  ;;  %v1535_v4 = vmul.f32 0.5, %v1503_v59 }
 0x49b   :  { %v1598_v43 = vmul.f32 0.5, %v2021_v41 }
 0x49c   :  { %2022 = vtanh.f32 %v1535_v4 }
 0x49d   :  { %v1630_v22 = vadd.f32 0.5, %v1598_v43 }
 0x49f   :  { %1663 = vst.msk [vmem:[%s3229_s9 + $0xe0] sm:$0xff] %vm1634_vm4, %v1630_v22  ;;  %v1466_v13 = vpop.xlane.xlu0 %1465 }
 0x4a0   :  { %v1504_v29 = vadd.f32 %v3007_v36, %v1466_v13 }
 0x4a2   :  { %v2023_v3 = vpop.eup %2022  ;;  %v1536_v49 = vmul.f32 0.5, %v1504_v29 }
 0x4a3   :  { %v1599_v26 = vmul.f32 0.5, %v2023_v3 }
 0x4a4   :  { %2024 = vtanh.f32 %v1536_v49 }
 0x4a5   :  { %v1631_v38 = vadd.f32 0.5, %v1599_v26 }
 0x4a7   :  { %1664 = vst.msk [vmem:[%s3229_s9 + $0xe8] sm:$0xff] %vm1634_vm4, %v1631_v38  ;;  %v1469_v6 = vpop.xlane.xlu1 %1468 }
 0x4a8   :  { %v1505_v11 = vadd.f32 %v3007_v36, %v1469_v6 }
 0x4aa   :  { %v2025_v10 = vpop.eup %2024  ;;  %v1537_v23 = vmul.f32 0.5, %v1505_v11 }
 0x4ab   :  { %v1600_v44 = vmul.f32 0.5, %v2025_v10 }
 0x4ac   :  { %2026 = vtanh.f32 %v1537_v23 }
 0x4ad   :  { %v1632_v21 = vadd.f32 0.5, %v1600_v44 }
 0x4af   :  { %1665 = vst.msk [vmem:[%s3229_s9 + $0xf0] sm:$0xff] %vm1634_vm4, %v1632_v21 }
 0x4b2   :  { %v2027_v39 = vpop.eup %2026 }
 0x4b3   :  { %v1601_v56 = vmul.f32 0.5, %v2027_v39 }
 0x4b5   :  { %v1633_v34 = vadd.f32 0.5, %v1601_v56 }
 0x4b7   :  { %1666 = vst.msk [vmem:[%s3229_s9 + $0xf8] sm:$0xff] %vm1634_vm4, %v1633_v34 }

</bundles_post_ra>
